<compile_context>
chip_gen: v7x
topology: tpu7x:2x2x1
jax: 0.10.0
libtpu: 0.0.40
codegen_flags: <defaults>
</compile_context>

<pallas_src>
import jax
import jax.numpy as jnp
from jax.experimental import pallas as pl
from jax.experimental.pallas import tpu as pltpu

BN_EPS = 1e-5

# Model hyper-parameters (small shapes, same structure as the PyTorch defaults).
NUM_LAYERS = 5       # 4 GINConv layers + the input representation
NUM_MLP_LAYERS = 2   # kernel hard-codes the 2-layer MLP of the reference config
INPUT_DIM = 32
HIDDEN_DIM = 64
OUTPUT_DIM = 32
NUM_NODES = 64
NUM_GRAPHS = 4


# ----------------------------------------------------------------------------
# Fused kernel: entire GIN forward in one pallas_call, everything in VMEM.
# ----------------------------------------------------------------------------
def gin_fused_kernel(a_ref, p_ref, h0_ref,
                     w1_ref, b1_ref,      # (L, H, H), (L, 1, H)  -- BN1 folded in
                     w2_ref, b2_ref,      # (L, H, H), (L, 1, H)  -- apply-BN folded in
                     so_ref, to_ref,      # (L, 1, H)             -- outer BN scale/shift
                     wp_ref, bsum_ref,    # (L+1, H, OUT), (1, OUT)
                     o_ref):
    A = a_ref[...]                       # (N, N)
    P = p_ref[...]                       # (G, N)
    h = h0_ref[...]                      # (N, H)  input rep, zero-padded 32->64

    # Layer-0 prediction on the input representation (padded channels are zero,
    # matching the zero-padded rows of wp[0]).
    pooled = jnp.dot(P, h, preferred_element_type=jnp.float32)             # (G, H)
    score = jnp.dot(pooled, wp_ref[0], preferred_element_type=jnp.float32)  # (G, OUT)

    for l in range(NUM_LAYERS - 1):      # static unroll over the 4 GIN layers
        # GINConv, sum aggregation, eps = 0 (learn_eps=False, init_eps=0)
        agg = jnp.dot(A, h, preferred_element_type=jnp.float32)
        z = h + agg
        # MLP hidden layer: Linear + BN (folded) + ReLU
        h1 = jnp.maximum(
            jnp.dot(z, w1_ref[l], preferred_element_type=jnp.float32) + b1_ref[l],
            0.0)
        # MLP output Linear with ApplyNodeFunc BN folded in, then ReLU
        h2 = jnp.dot(h1, w2_ref[l], preferred_element_type=jnp.float32) + b2_ref[l]
        h3 = jnp.maximum(h2, 0.0)
        # GIN outer BatchNorm (eval, scale/shift) + ReLU
        h = jnp.maximum(h3 * so_ref[l] + to_ref[l], 0.0)

        # SumPooling + per-layer prediction Linear, accumulated in-register
        pooled = jnp.dot(P, h, preferred_element_type=jnp.float32)
        score = score + jnp.dot(pooled, wp_ref[l + 1],
                                preferred_element_type=jnp.float32)

    # dropout(p=0.5) in eval mode == identity; biases pre-summed host-side.
    o_ref[...] = score + bsum_ref[...]


def gin_forward(A, P, h0_pad, packed):
    args = (A, P, h0_pad,
            packed["w1"], packed["b1"], packed["w2"], packed["b2"],
            packed["so"], packed["to"], packed["wp"], packed["bsum"])
    vmem = pl.BlockSpec(memory_space=pltpu.MemorySpace.VMEM)
    return pl.pallas_call(
        gin_fused_kernel,
        out_shape=jax.ShapeDtypeStruct((NUM_GRAPHS, OUTPUT_DIM), jnp.float32),
        in_specs=[vmem] * len(args),
        out_specs=vmem,
    )(*args)


# ----------------------------------------------------------------------------
# Deterministic parameter init (fresh-module eval semantics) + host-side packing
# ----------------------------------------------------------------------------
def _linear(key, din, dout):
    kw, kb = jax.random.split(key)
    # stored pre-transposed as (din, dout) so the kernel does x @ W
    w = jax.random.normal(kw, (din, dout), jnp.float32) * (1.0 / jnp.sqrt(din))
    b = jax.random.normal(kb, (1, dout), jnp.float32) * 0.01
    return w, b


def _bn_folded(c):
    # PyTorch BatchNorm1d defaults, eval mode: scale = 1/sqrt(1+eps), shift = 0
    scale = jnp.full((1, c), 1.0 / jnp.sqrt(1.0 + BN_EPS), jnp.float32)
    shift = jnp.zeros((1, c), jnp.float32)
    return scale, shift


def _fold_bn_into_linear(w, b, scale, shift):
    # (x @ w + b) * scale + shift  ==  x @ (w * scale) + (b * scale + shift)
    return w * scale, b * scale + shift


def init_params(key):
    raw = {"gin": [], "pred": []}
    for layer in range(NUM_LAYERS - 1):
        din = INPUT_DIM if layer == 0 else HIDDEN_DIM
        key, k1, k2 = jax.random.split(key, 3)
        w1, b1 = _linear(k1, din, HIDDEN_DIM)
        w2, b2 = _linear(k2, HIDDEN_DIM, HIDDEN_DIM)
        s1, t1 = _bn_folded(HIDDEN_DIM)   # MLP internal BN
        sa, ta = _bn_folded(HIDDEN_DIM)   # ApplyNodeFunc BN
        so, to = _bn_folded(HIDDEN_DIM)   # GIN outer BN
        raw["gin"].append(dict(w1=w1, b1=b1, s1=s1, t1=t1, w2=w2, b2=b2,
                               sa=sa, ta=ta, so=so, to=to))
    for layer in range(NUM_LAYERS):
        din = INPUT_DIM if layer == 0 else HIDDEN_DIM
        key, k = jax.random.split(key)
        wp, bp = _linear(k, din, OUTPUT_DIM)
        raw["pred"].append(dict(wp=wp, bp=bp))
    return raw


def pack_params(raw):
    """Fold BNs into Linears, zero-pad layer-0 shapes, stack per-layer tensors."""
    pad_rows = HIDDEN_DIM - INPUT_DIM
    w1s, b1s, w2s, b2s, sos, tos = [], [], [], [], [], []
    for layer, p in enumerate(raw["gin"]):
        w1f, b1f = _fold_bn_into_linear(p["w1"], p["b1"], p["s1"], p["t1"])
        if layer == 0:
            w1f = jnp.pad(w1f, ((0, pad_rows), (0, 0)))   # zero rows: exact
        w2f, b2f = _fold_bn_into_linear(p["w2"], p["b2"], p["sa"], p["ta"])
        w1s.append(w1f); b1s.append(b1f)
        w2s.append(w2f); b2s.append(b2f)
        sos.append(p["so"]); tos.append(p["to"])

    wps = []
    bsum = jnp.zeros((1, OUTPUT_DIM), jnp.float32)
    for layer, p in enumerate(raw["pred"]):
        wp = p["wp"]
        if layer == 0:
            wp = jnp.pad(wp, ((0, pad_rows), (0, 0)))      # zero rows: exact
        wps.append(wp)
        bsum = bsum + p["bp"]

    return dict(w1=jnp.stack(w1s), b1=jnp.stack(b1s),
                w2=jnp.stack(w2s), b2=jnp.stack(b2s),
                so=jnp.stack(sos), to=jnp.stack(tos),
                wp=jnp.stack(wps), bsum=bsum)


# ----------------------------------------------------------------------------
# Pure-JAX reference (unfolded, unpadded) for a correctness sanity check.
# ----------------------------------------------------------------------------
def gin_reference(A, P, h, raw):
    hi = jax.lax.Precision.HIGHEST
    hidden_rep = [h]
    for p in raw["gin"]:
        z = h + jnp.dot(A, h, precision=hi)
        h1 = jax.nn.relu(jnp.dot(z, p["w1"], precision=hi) * p["s1"]
                         + p["b1"] * p["s1"] + p["t1"])
        h2 = jnp.dot(h1, p["w2"], precision=hi) + p["b2"]
        h3 = jax.nn.relu(h2 * p["sa"] + p["ta"])
        h = jax.nn.relu(h3 * p["so"] + p["to"])
        hidden_rep.append(h)
    score = jnp.zeros((P.shape[0], OUTPUT_DIM), jnp.float32)
    for hr, p in zip(hidden_rep, raw["pred"]):
        pooled = jnp.dot(P, hr, precision=hi)
        score = score + jnp.dot(pooled, p["wp"], precision=hi) + p["bp"]
    return score


# ----------------------------------------------------------------------------
if __name__ == "__main__":
    key = jax.random.PRNGKey(0)
    k_h, k_a, k_p = jax.random.split(key, 3)

    # node features (N, input_dim)
    h = jax.random.normal(k_h, (NUM_NODES, INPUT_DIM), jnp.float32)

    # random symmetric adjacency without self-loops
    a_rand = jax.random.bernoulli(k_a, 0.2, (NUM_NODES, NUM_NODES))
    A = jnp.triu(a_rand.astype(jnp.float32), k=1)
    A = A + A.T

    # pooling matrix: NUM_GRAPHS graphs, contiguous equal-size node blocks
    nodes_per_graph = NUM_NODES // NUM_GRAPHS
    graph_ids = jnp.repeat(jnp.arange(NUM_GRAPHS), nodes_per_graph)
    P = jax.nn.one_hot(graph_ids, NUM_GRAPHS, dtype=jnp.float32).T  # (G, N)

    raw = init_params(k_p)
    packed = pack_params(raw)
    h0_pad = jnp.pad(h, ((0, 0), (0, HIDDEN_DIM - INPUT_DIM)))      # (N, H)

    fwd = jax.jit(gin_forward)
    out = jax.block_until_ready(fwd(A, P, h0_pad, packed))

    assert out.shape == (NUM_GRAPHS, OUTPUT_DIM)
    assert jnp.all(jnp.isfinite(out))

    ref = gin_reference(A, P, h, raw)
    rel_err = jnp.max(jnp.abs(out - ref)) / (jnp.max(jnp.abs(ref)) + 1e-6)
    assert float(rel_err) < 5e-3, f"rel_err={float(rel_err)}"
    print("KERNEL_OK")
</pallas_src>

<mosaic_0001>
module attributes {stable_mosaic.version = 11 : i64} {
  func.func @gin_fused_kernel(%arg0: memref<64x64xf32, #tpu.memory_space<vmem>>, %arg1: memref<4x64xf32, #tpu.memory_space<vmem>>, %arg2: memref<64x64xf32, #tpu.memory_space<vmem>>, %arg3: memref<4x64x64xf32, #tpu.memory_space<vmem>>, %arg4: memref<4x1x64xf32, #tpu.memory_space<vmem>>, %arg5: memref<4x64x64xf32, #tpu.memory_space<vmem>>, %arg6: memref<4x1x64xf32, #tpu.memory_space<vmem>>, %arg7: memref<4x1x64xf32, #tpu.memory_space<vmem>>, %arg8: memref<4x1x64xf32, #tpu.memory_space<vmem>>, %arg9: memref<5x64x32xf32, #tpu.memory_space<vmem>>, %arg10: memref<1x32xf32, #tpu.memory_space<vmem>>, %arg11: memref<4x32xf32, #tpu.memory_space<vmem>>) attributes {dimension_semantics = [], scalar_prefetch = 0 : i64, scratch_operands = 0 : i64, tpu.core_type = #tpu.core_type<tc>} {
    %c0 = arith.constant 0 : index
    %c0_0 = arith.constant 0 : index
    %0 = vector.load %arg0[%c0, %c0_0] : memref<64x64xf32, #tpu.memory_space<vmem>>, vector<64x64xf32>
    %c0_1 = arith.constant 0 : index
    %c0_2 = arith.constant 0 : index
    %1 = vector.load %arg1[%c0_1, %c0_2] : memref<4x64xf32, #tpu.memory_space<vmem>>, vector<4x64xf32>
    %c0_3 = arith.constant 0 : index
    %c0_4 = arith.constant 0 : index
    %2 = vector.load %arg2[%c0_3, %c0_4] : memref<64x64xf32, #tpu.memory_space<vmem>>, vector<64x64xf32>
    %cst = arith.constant dense<0.000000e+00> : vector<4x64xf32>
    %3 = tpu.matmul %1, %2, %cst {dimension_numbers = #tpu.dot_dimension_numbers<[1], [0], [0], [1], [0, 0, 1, 1], [], []>} : vector<4x64xf32>, vector<64x64xf32>, vector<4x64xf32> -> vector<4x64xf32>
    %c0_5 = arith.constant 0 : index
    %c0_6 = arith.constant 0 : index
    %c0_7 = arith.constant 0 : index
    %4 = vector.load %arg9[%c0_5, %c0_6, %c0_7] : memref<5x64x32xf32, #tpu.memory_space<vmem>>, vector<1x64x32xf32>
    %5 = vector.shape_cast %4 : vector<1x64x32xf32> to vector<64x32xf32>
    %cst_8 = arith.constant dense<0.000000e+00> : vector<4x32xf32>
    %6 = tpu.matmul %3, %5, %cst_8 {dimension_numbers = #tpu.dot_dimension_numbers<[1], [0], [0], [1], [0, 0, 1, 1], [], []>} : vector<4x64xf32>, vector<64x32xf32>, vector<4x32xf32> -> vector<4x32xf32>
    %cst_9 = arith.constant dense<0.000000e+00> : vector<64x64xf32>
    %7 = tpu.matmul %0, %2, %cst_9 {dimension_numbers = #tpu.dot_dimension_numbers<[1], [0], [0], [1], [0, 0, 1, 1], [], []>} : vector<64x64xf32>, vector<64x64xf32>, vector<64x64xf32> -> vector<64x64xf32>
    %8 = arith.addf %2, %7 : vector<64x64xf32>
    %c0_10 = arith.constant 0 : index
    %c0_11 = arith.constant 0 : index
    %c0_12 = arith.constant 0 : index
    %9 = vector.load %arg3[%c0_10, %c0_11, %c0_12] : memref<4x64x64xf32, #tpu.memory_space<vmem>>, vector<1x64x64xf32>
    %10 = vector.shape_cast %9 : vector<1x64x64xf32> to vector<64x64xf32>
    %cst_13 = arith.constant dense<0.000000e+00> : vector<64x64xf32>
    %11 = tpu.matmul %8, %10, %cst_13 {dimension_numbers = #tpu.dot_dimension_numbers<[1], [0], [0], [1], [0, 0, 1, 1], [], []>} : vector<64x64xf32>, vector<64x64xf32>, vector<64x64xf32> -> vector<64x64xf32>
    %c0_14 = arith.constant 0 : index
    %c0_15 = arith.constant 0 : index
    %c0_16 = arith.constant 0 : index
    %12 = vector.load %arg4[%c0_14, %c0_15, %c0_16] : memref<4x1x64xf32, #tpu.memory_space<vmem>>, vector<1x1x64xf32>
    %13 = vector.shape_cast %12 : vector<1x1x64xf32> to vector<1x64xf32>
    %14 = vector.broadcast %13 : vector<1x64xf32> to vector<64x64xf32>
    %15 = arith.addf %11, %14 : vector<64x64xf32>
    %cst_17 = arith.constant 0.000000e+00 : f32
    %16 = vector.broadcast %cst_17 : f32 to vector<64x64xf32>
    %17 = arith.maximumf %15, %16 : vector<64x64xf32>
    %c0_18 = arith.constant 0 : index
    %c0_19 = arith.constant 0 : index
    %c0_20 = arith.constant 0 : index
    %18 = vector.load %arg5[%c0_18, %c0_19, %c0_20] : memref<4x64x64xf32, #tpu.memory_space<vmem>>, vector<1x64x64xf32>
    %19 = vector.shape_cast %18 : vector<1x64x64xf32> to vector<64x64xf32>
    %cst_21 = arith.constant dense<0.000000e+00> : vector<64x64xf32>
    %20 = tpu.matmul %17, %19, %cst_21 {dimension_numbers = #tpu.dot_dimension_numbers<[1], [0], [0], [1], [0, 0, 1, 1], [], []>} : vector<64x64xf32>, vector<64x64xf32>, vector<64x64xf32> -> vector<64x64xf32>
    %c0_22 = arith.constant 0 : index
    %c0_23 = arith.constant 0 : index
    %c0_24 = arith.constant 0 : index
    %21 = vector.load %arg6[%c0_22, %c0_23, %c0_24] : memref<4x1x64xf32, #tpu.memory_space<vmem>>, vector<1x1x64xf32>
    %22 = vector.shape_cast %21 : vector<1x1x64xf32> to vector<1x64xf32>
    %23 = vector.broadcast %22 : vector<1x64xf32> to vector<64x64xf32>
    %24 = arith.addf %20, %23 : vector<64x64xf32>
    %cst_25 = arith.constant 0.000000e+00 : f32
    %25 = vector.broadcast %cst_25 : f32 to vector<64x64xf32>
    %26 = arith.maximumf %24, %25 : vector<64x64xf32>
    %c0_26 = arith.constant 0 : index
    %c0_27 = arith.constant 0 : index
    %c0_28 = arith.constant 0 : index
    %27 = vector.load %arg7[%c0_26, %c0_27, %c0_28] : memref<4x1x64xf32, #tpu.memory_space<vmem>>, vector<1x1x64xf32>
    %28 = vector.shape_cast %27 : vector<1x1x64xf32> to vector<1x64xf32>
    %29 = vector.broadcast %28 : vector<1x64xf32> to vector<64x64xf32>
    %30 = arith.mulf %26, %29 : vector<64x64xf32>
    %c0_29 = arith.constant 0 : index
    %c0_30 = arith.constant 0 : index
    %c0_31 = arith.constant 0 : index
    %31 = vector.load %arg8[%c0_29, %c0_30, %c0_31] : memref<4x1x64xf32, #tpu.memory_space<vmem>>, vector<1x1x64xf32>
    %32 = vector.shape_cast %31 : vector<1x1x64xf32> to vector<1x64xf32>
    %33 = vector.broadcast %32 : vector<1x64xf32> to vector<64x64xf32>
    %34 = arith.addf %30, %33 : vector<64x64xf32>
    %cst_32 = arith.constant 0.000000e+00 : f32
    %35 = vector.broadcast %cst_32 : f32 to vector<64x64xf32>
    %36 = arith.maximumf %34, %35 : vector<64x64xf32>
    %cst_33 = arith.constant dense<0.000000e+00> : vector<4x64xf32>
    %37 = tpu.matmul %1, %36, %cst_33 {dimension_numbers = #tpu.dot_dimension_numbers<[1], [0], [0], [1], [0, 0, 1, 1], [], []>} : vector<4x64xf32>, vector<64x64xf32>, vector<4x64xf32> -> vector<4x64xf32>
    %c1 = arith.constant 1 : index
    %c0_34 = arith.constant 0 : index
    %c0_35 = arith.constant 0 : index
    %38 = vector.load %arg9[%c1, %c0_34, %c0_35] : memref<5x64x32xf32, #tpu.memory_space<vmem>>, vector<1x64x32xf32>
    %39 = vector.shape_cast %38 : vector<1x64x32xf32> to vector<64x32xf32>
    %cst_36 = arith.constant dense<0.000000e+00> : vector<4x32xf32>
    %40 = tpu.matmul %37, %39, %cst_36 {dimension_numbers = #tpu.dot_dimension_numbers<[1], [0], [0], [1], [0, 0, 1, 1], [], []>} : vector<4x64xf32>, vector<64x32xf32>, vector<4x32xf32> -> vector<4x32xf32>
    %41 = arith.addf %6, %40 : vector<4x32xf32>
    %cst_37 = arith.constant dense<0.000000e+00> : vector<64x64xf32>
    %42 = tpu.matmul %0, %36, %cst_37 {dimension_numbers = #tpu.dot_dimension_numbers<[1], [0], [0], [1], [0, 0, 1, 1], [], []>} : vector<64x64xf32>, vector<64x64xf32>, vector<64x64xf32> -> vector<64x64xf32>
    %43 = arith.addf %36, %42 : vector<64x64xf32>
    %c1_38 = arith.constant 1 : index
    %c0_39 = arith.constant 0 : index
    %c0_40 = arith.constant 0 : index
    %44 = vector.load %arg3[%c1_38, %c0_39, %c0_40] : memref<4x64x64xf32, #tpu.memory_space<vmem>>, vector<1x64x64xf32>
    %45 = vector.shape_cast %44 : vector<1x64x64xf32> to vector<64x64xf32>
    %cst_41 = arith.constant dense<0.000000e+00> : vector<64x64xf32>
    %46 = tpu.matmul %43, %45, %cst_41 {dimension_numbers = #tpu.dot_dimension_numbers<[1], [0], [0], [1], [0, 0, 1, 1], [], []>} : vector<64x64xf32>, vector<64x64xf32>, vector<64x64xf32> -> vector<64x64xf32>
    %c1_42 = arith.constant 1 : index
    %c0_43 = arith.constant 0 : index
    %c0_44 = arith.constant 0 : index
    %47 = vector.load %arg4[%c1_42, %c0_43, %c0_44] : memref<4x1x64xf32, #tpu.memory_space<vmem>>, vector<1x1x64xf32>
    %48 = vector.shape_cast %47 : vector<1x1x64xf32> to vector<1x64xf32>
    %49 = vector.broadcast %48 : vector<1x64xf32> to vector<64x64xf32>
    %50 = arith.addf %46, %49 : vector<64x64xf32>
    %cst_45 = arith.constant 0.000000e+00 : f32
    %51 = vector.broadcast %cst_45 : f32 to vector<64x64xf32>
    %52 = arith.maximumf %50, %51 : vector<64x64xf32>
    %c1_46 = arith.constant 1 : index
    %c0_47 = arith.constant 0 : index
    %c0_48 = arith.constant 0 : index
    %53 = vector.load %arg5[%c1_46, %c0_47, %c0_48] : memref<4x64x64xf32, #tpu.memory_space<vmem>>, vector<1x64x64xf32>
    %54 = vector.shape_cast %53 : vector<1x64x64xf32> to vector<64x64xf32>
    %cst_49 = arith.constant dense<0.000000e+00> : vector<64x64xf32>
    %55 = tpu.matmul %52, %54, %cst_49 {dimension_numbers = #tpu.dot_dimension_numbers<[1], [0], [0], [1], [0, 0, 1, 1], [], []>} : vector<64x64xf32>, vector<64x64xf32>, vector<64x64xf32> -> vector<64x64xf32>
    %c1_50 = arith.constant 1 : index
    %c0_51 = arith.constant 0 : index
    %c0_52 = arith.constant 0 : index
    %56 = vector.load %arg6[%c1_50, %c0_51, %c0_52] : memref<4x1x64xf32, #tpu.memory_space<vmem>>, vector<1x1x64xf32>
    %57 = vector.shape_cast %56 : vector<1x1x64xf32> to vector<1x64xf32>
    %58 = vector.broadcast %57 : vector<1x64xf32> to vector<64x64xf32>
    %59 = arith.addf %55, %58 : vector<64x64xf32>
    %cst_53 = arith.constant 0.000000e+00 : f32
    %60 = vector.broadcast %cst_53 : f32 to vector<64x64xf32>
    %61 = arith.maximumf %59, %60 : vector<64x64xf32>
    %c1_54 = arith.constant 1 : index
    %c0_55 = arith.constant 0 : index
    %c0_56 = arith.constant 0 : index
    %62 = vector.load %arg7[%c1_54, %c0_55, %c0_56] : memref<4x1x64xf32, #tpu.memory_space<vmem>>, vector<1x1x64xf32>
    %63 = vector.shape_cast %62 : vector<1x1x64xf32> to vector<1x64xf32>
    %64 = vector.broadcast %63 : vector<1x64xf32> to vector<64x64xf32>
    %65 = arith.mulf %61, %64 : vector<64x64xf32>
    %c1_57 = arith.constant 1 : index
    %c0_58 = arith.constant 0 : index
    %c0_59 = arith.constant 0 : index
    %66 = vector.load %arg8[%c1_57, %c0_58, %c0_59] : memref<4x1x64xf32, #tpu.memory_space<vmem>>, vector<1x1x64xf32>
    %67 = vector.shape_cast %66 : vector<1x1x64xf32> to vector<1x64xf32>
    %68 = vector.broadcast %67 : vector<1x64xf32> to vector<64x64xf32>
    %69 = arith.addf %65, %68 : vector<64x64xf32>
    %cst_60 = arith.constant 0.000000e+00 : f32
    %70 = vector.broadcast %cst_60 : f32 to vector<64x64xf32>
    %71 = arith.maximumf %69, %70 : vector<64x64xf32>
    %cst_61 = arith.constant dense<0.000000e+00> : vector<4x64xf32>
    %72 = tpu.matmul %1, %71, %cst_61 {dimension_numbers = #tpu.dot_dimension_numbers<[1], [0], [0], [1], [0, 0, 1, 1], [], []>} : vector<4x64xf32>, vector<64x64xf32>, vector<4x64xf32> -> vector<4x64xf32>
    %c2 = arith.constant 2 : index
    %c0_62 = arith.constant 0 : index
    %c0_63 = arith.constant 0 : index
    %73 = vector.load %arg9[%c2, %c0_62, %c0_63] : memref<5x64x32xf32, #tpu.memory_space<vmem>>, vector<1x64x32xf32>
    %74 = vector.shape_cast %73 : vector<1x64x32xf32> to vector<64x32xf32>
    %cst_64 = arith.constant dense<0.000000e+00> : vector<4x32xf32>
    %75 = tpu.matmul %72, %74, %cst_64 {dimension_numbers = #tpu.dot_dimension_numbers<[1], [0], [0], [1], [0, 0, 1, 1], [], []>} : vector<4x64xf32>, vector<64x32xf32>, vector<4x32xf32> -> vector<4x32xf32>
    %76 = arith.addf %41, %75 : vector<4x32xf32>
    %cst_65 = arith.constant dense<0.000000e+00> : vector<64x64xf32>
    %77 = tpu.matmul %0, %71, %cst_65 {dimension_numbers = #tpu.dot_dimension_numbers<[1], [0], [0], [1], [0, 0, 1, 1], [], []>} : vector<64x64xf32>, vector<64x64xf32>, vector<64x64xf32> -> vector<64x64xf32>
    %78 = arith.addf %71, %77 : vector<64x64xf32>
    %c2_66 = arith.constant 2 : index
    %c0_67 = arith.constant 0 : index
    %c0_68 = arith.constant 0 : index
    %79 = vector.load %arg3[%c2_66, %c0_67, %c0_68] : memref<4x64x64xf32, #tpu.memory_space<vmem>>, vector<1x64x64xf32>
    %80 = vector.shape_cast %79 : vector<1x64x64xf32> to vector<64x64xf32>
    %cst_69 = arith.constant dense<0.000000e+00> : vector<64x64xf32>
    %81 = tpu.matmul %78, %80, %cst_69 {dimension_numbers = #tpu.dot_dimension_numbers<[1], [0], [0], [1], [0, 0, 1, 1], [], []>} : vector<64x64xf32>, vector<64x64xf32>, vector<64x64xf32> -> vector<64x64xf32>
    %c2_70 = arith.constant 2 : index
    %c0_71 = arith.constant 0 : index
    %c0_72 = arith.constant 0 : index
    %82 = vector.load %arg4[%c2_70, %c0_71, %c0_72] : memref<4x1x64xf32, #tpu.memory_space<vmem>>, vector<1x1x64xf32>
    %83 = vector.shape_cast %82 : vector<1x1x64xf32> to vector<1x64xf32>
    %84 = vector.broadcast %83 : vector<1x64xf32> to vector<64x64xf32>
    %85 = arith.addf %81, %84 : vector<64x64xf32>
    %cst_73 = arith.constant 0.000000e+00 : f32
    %86 = vector.broadcast %cst_73 : f32 to vector<64x64xf32>
    %87 = arith.maximumf %85, %86 : vector<64x64xf32>
    %c2_74 = arith.constant 2 : index
    %c0_75 = arith.constant 0 : index
    %c0_76 = arith.constant 0 : index
    %88 = vector.load %arg5[%c2_74, %c0_75, %c0_76] : memref<4x64x64xf32, #tpu.memory_space<vmem>>, vector<1x64x64xf32>
    %89 = vector.shape_cast %88 : vector<1x64x64xf32> to vector<64x64xf32>
    %cst_77 = arith.constant dense<0.000000e+00> : vector<64x64xf32>
    %90 = tpu.matmul %87, %89, %cst_77 {dimension_numbers = #tpu.dot_dimension_numbers<[1], [0], [0], [1], [0, 0, 1, 1], [], []>} : vector<64x64xf32>, vector<64x64xf32>, vector<64x64xf32> -> vector<64x64xf32>
    %c2_78 = arith.constant 2 : index
    %c0_79 = arith.constant 0 : index
    %c0_80 = arith.constant 0 : index
    %91 = vector.load %arg6[%c2_78, %c0_79, %c0_80] : memref<4x1x64xf32, #tpu.memory_space<vmem>>, vector<1x1x64xf32>
    %92 = vector.shape_cast %91 : vector<1x1x64xf32> to vector<1x64xf32>
    %93 = vector.broadcast %92 : vector<1x64xf32> to vector<64x64xf32>
    %94 = arith.addf %90, %93 : vector<64x64xf32>
    %cst_81 = arith.constant 0.000000e+00 : f32
    %95 = vector.broadcast %cst_81 : f32 to vector<64x64xf32>
    %96 = arith.maximumf %94, %95 : vector<64x64xf32>
    %c2_82 = arith.constant 2 : index
    %c0_83 = arith.constant 0 : index
    %c0_84 = arith.constant 0 : index
    %97 = vector.load %arg7[%c2_82, %c0_83, %c0_84] : memref<4x1x64xf32, #tpu.memory_space<vmem>>, vector<1x1x64xf32>
    %98 = vector.shape_cast %97 : vector<1x1x64xf32> to vector<1x64xf32>
    %99 = vector.broadcast %98 : vector<1x64xf32> to vector<64x64xf32>
    %100 = arith.mulf %96, %99 : vector<64x64xf32>
    %c2_85 = arith.constant 2 : index
    %c0_86 = arith.constant 0 : index
    %c0_87 = arith.constant 0 : index
    %101 = vector.load %arg8[%c2_85, %c0_86, %c0_87] : memref<4x1x64xf32, #tpu.memory_space<vmem>>, vector<1x1x64xf32>
    %102 = vector.shape_cast %101 : vector<1x1x64xf32> to vector<1x64xf32>
    %103 = vector.broadcast %102 : vector<1x64xf32> to vector<64x64xf32>
    %104 = arith.addf %100, %103 : vector<64x64xf32>
    %cst_88 = arith.constant 0.000000e+00 : f32
    %105 = vector.broadcast %cst_88 : f32 to vector<64x64xf32>
    %106 = arith.maximumf %104, %105 : vector<64x64xf32>
    %cst_89 = arith.constant dense<0.000000e+00> : vector<4x64xf32>
    %107 = tpu.matmul %1, %106, %cst_89 {dimension_numbers = #tpu.dot_dimension_numbers<[1], [0], [0], [1], [0, 0, 1, 1], [], []>} : vector<4x64xf32>, vector<64x64xf32>, vector<4x64xf32> -> vector<4x64xf32>
    %c3 = arith.constant 3 : index
    %c0_90 = arith.constant 0 : index
    %c0_91 = arith.constant 0 : index
    %108 = vector.load %arg9[%c3, %c0_90, %c0_91] : memref<5x64x32xf32, #tpu.memory_space<vmem>>, vector<1x64x32xf32>
    %109 = vector.shape_cast %108 : vector<1x64x32xf32> to vector<64x32xf32>
    %cst_92 = arith.constant dense<0.000000e+00> : vector<4x32xf32>
    %110 = tpu.matmul %107, %109, %cst_92 {dimension_numbers = #tpu.dot_dimension_numbers<[1], [0], [0], [1], [0, 0, 1, 1], [], []>} : vector<4x64xf32>, vector<64x32xf32>, vector<4x32xf32> -> vector<4x32xf32>
    %111 = arith.addf %76, %110 : vector<4x32xf32>
    %cst_93 = arith.constant dense<0.000000e+00> : vector<64x64xf32>
    %112 = tpu.matmul %0, %106, %cst_93 {dimension_numbers = #tpu.dot_dimension_numbers<[1], [0], [0], [1], [0, 0, 1, 1], [], []>} : vector<64x64xf32>, vector<64x64xf32>, vector<64x64xf32> -> vector<64x64xf32>
    %113 = arith.addf %106, %112 : vector<64x64xf32>
    %c3_94 = arith.constant 3 : index
    %c0_95 = arith.constant 0 : index
    %c0_96 = arith.constant 0 : index
    %114 = vector.load %arg3[%c3_94, %c0_95, %c0_96] : memref<4x64x64xf32, #tpu.memory_space<vmem>>, vector<1x64x64xf32>
    %115 = vector.shape_cast %114 : vector<1x64x64xf32> to vector<64x64xf32>
    %cst_97 = arith.constant dense<0.000000e+00> : vector<64x64xf32>
    %116 = tpu.matmul %113, %115, %cst_97 {dimension_numbers = #tpu.dot_dimension_numbers<[1], [0], [0], [1], [0, 0, 1, 1], [], []>} : vector<64x64xf32>, vector<64x64xf32>, vector<64x64xf32> -> vector<64x64xf32>
    %c3_98 = arith.constant 3 : index
    %c0_99 = arith.constant 0 : index
    %c0_100 = arith.constant 0 : index
    %117 = vector.load %arg4[%c3_98, %c0_99, %c0_100] : memref<4x1x64xf32, #tpu.memory_space<vmem>>, vector<1x1x64xf32>
    %118 = vector.shape_cast %117 : vector<1x1x64xf32> to vector<1x64xf32>
    %119 = vector.broadcast %118 : vector<1x64xf32> to vector<64x64xf32>
    %120 = arith.addf %116, %119 : vector<64x64xf32>
    %cst_101 = arith.constant 0.000000e+00 : f32
    %121 = vector.broadcast %cst_101 : f32 to vector<64x64xf32>
    %122 = arith.maximumf %120, %121 : vector<64x64xf32>
    %c3_102 = arith.constant 3 : index
    %c0_103 = arith.constant 0 : index
    %c0_104 = arith.constant 0 : index
    %123 = vector.load %arg5[%c3_102, %c0_103, %c0_104] : memref<4x64x64xf32, #tpu.memory_space<vmem>>, vector<1x64x64xf32>
    %124 = vector.shape_cast %123 : vector<1x64x64xf32> to vector<64x64xf32>
    %cst_105 = arith.constant dense<0.000000e+00> : vector<64x64xf32>
    %125 = tpu.matmul %122, %124, %cst_105 {dimension_numbers = #tpu.dot_dimension_numbers<[1], [0], [0], [1], [0, 0, 1, 1], [], []>} : vector<64x64xf32>, vector<64x64xf32>, vector<64x64xf32> -> vector<64x64xf32>
    %c3_106 = arith.constant 3 : index
    %c0_107 = arith.constant 0 : index
    %c0_108 = arith.constant 0 : index
    %126 = vector.load %arg6[%c3_106, %c0_107, %c0_108] : memref<4x1x64xf32, #tpu.memory_space<vmem>>, vector<1x1x64xf32>
    %127 = vector.shape_cast %126 : vector<1x1x64xf32> to vector<1x64xf32>
    %128 = vector.broadcast %127 : vector<1x64xf32> to vector<64x64xf32>
    %129 = arith.addf %125, %128 : vector<64x64xf32>
    %cst_109 = arith.constant 0.000000e+00 : f32
    %130 = vector.broadcast %cst_109 : f32 to vector<64x64xf32>
    %131 = arith.maximumf %129, %130 : vector<64x64xf32>
    %c3_110 = arith.constant 3 : index
    %c0_111 = arith.constant 0 : index
    %c0_112 = arith.constant 0 : index
    %132 = vector.load %arg7[%c3_110, %c0_111, %c0_112] : memref<4x1x64xf32, #tpu.memory_space<vmem>>, vector<1x1x64xf32>
    %133 = vector.shape_cast %132 : vector<1x1x64xf32> to vector<1x64xf32>
    %134 = vector.broadcast %133 : vector<1x64xf32> to vector<64x64xf32>
    %135 = arith.mulf %131, %134 : vector<64x64xf32>
    %c3_113 = arith.constant 3 : index
    %c0_114 = arith.constant 0 : index
    %c0_115 = arith.constant 0 : index
    %136 = vector.load %arg8[%c3_113, %c0_114, %c0_115] : memref<4x1x64xf32, #tpu.memory_space<vmem>>, vector<1x1x64xf32>
    %137 = vector.shape_cast %136 : vector<1x1x64xf32> to vector<1x64xf32>
    %138 = vector.broadcast %137 : vector<1x64xf32> to vector<64x64xf32>
    %139 = arith.addf %135, %138 : vector<64x64xf32>
    %cst_116 = arith.constant 0.000000e+00 : f32
    %140 = vector.broadcast %cst_116 : f32 to vector<64x64xf32>
    %141 = arith.maximumf %139, %140 : vector<64x64xf32>
    %cst_117 = arith.constant dense<0.000000e+00> : vector<4x64xf32>
    %142 = tpu.matmul %1, %141, %cst_117 {dimension_numbers = #tpu.dot_dimension_numbers<[1], [0], [0], [1], [0, 0, 1, 1], [], []>} : vector<4x64xf32>, vector<64x64xf32>, vector<4x64xf32> -> vector<4x64xf32>
    %c4 = arith.constant 4 : index
    %c0_118 = arith.constant 0 : index
    %c0_119 = arith.constant 0 : index
    %143 = vector.load %arg9[%c4, %c0_118, %c0_119] : memref<5x64x32xf32, #tpu.memory_space<vmem>>, vector<1x64x32xf32>
    %144 = vector.shape_cast %143 : vector<1x64x32xf32> to vector<64x32xf32>
    %cst_120 = arith.constant dense<0.000000e+00> : vector<4x32xf32>
    %145 = tpu.matmul %142, %144, %cst_120 {dimension_numbers = #tpu.dot_dimension_numbers<[1], [0], [0], [1], [0, 0, 1, 1], [], []>} : vector<4x64xf32>, vector<64x32xf32>, vector<4x32xf32> -> vector<4x32xf32>
    %146 = arith.addf %111, %145 : vector<4x32xf32>
    %c0_121 = arith.constant 0 : index
    %c0_122 = arith.constant 0 : index
    %147 = vector.load %arg10[%c0_121, %c0_122] : memref<1x32xf32, #tpu.memory_space<vmem>>, vector<1x32xf32>
    %148 = vector.broadcast %147 : vector<1x32xf32> to vector<4x32xf32>
    %149 = arith.addf %146, %148 : vector<4x32xf32>
    %c0_123 = arith.constant 0 : index
    %c0_124 = arith.constant 0 : index
    %150 = vector.load %arg11[%c0_123, %c0_124] : memref<4x32xf32, #tpu.memory_space<vmem>>, vector<4x32xf32>
    tpu.vector_store %arg11[%c0_123, %c0_124], %149 {strides = array<i32>} : memref<4x32xf32, #tpu.memory_space<vmem>>, vector<4x32xf32>,
    return
  }
}

</mosaic_0001>

<bundles_post_ra>
// kernel: gin_forward.1
= control target key start
LH: loop header
LB: loop body
LE: loop exit
PB: predicated region body
PF: predicated region fallthrough
CT: control target
= control target key end

     0   :  { %16 = vsyncpa [#allocation3], 0  ;;  %s5284_s0 = inlined_call_operand.hbm [shape: f32[64,64], index: 0, kind: input, shape index: {}]   ;;  %s5285_s1 = inlined_call_operand.hbm [shape: f32[4,64], index: 1, kind: input, shape index: {}]   ;;  %s5286_s2 = inlined_call_operand.hbm [shape: f32[64,64], index: 2, kind: input, shape index: {}]   ;;  %s5287_s3 = inlined_call_operand.vmem [shape: f32[4,64,64], index: 3, kind: input, shape index: {}]   ;;  %s5288_s4 = inlined_call_operand.hbm [shape: f32[4,1,64], index: 4, kind: input, shape index: {}]   ;;  %s5289_s5 = inlined_call_operand.vmem [shape: f32[4,64,64], index: 5, kind: input, shape index: {}]   ;;  %s5290_s6 = inlined_call_operand.hbm [shape: f32[4,1,64], index: 6, kind: input, shape index: {}]   ;;  %s5291_s7 = inlined_call_operand.hbm [shape: f32[4,1,64], index: 7, kind: input, shape index: {}]   ;;  %s5292_s8 = inlined_call_operand.hbm [shape: f32[4,1,64], index: 8, kind: input, shape index: {}]   ;;  %s5293_s9 = inlined_call_operand.vmem [shape: f32[5,64,32], index: 9, kind: input, shape index: {}]   ;;  %s5294_s10 = inlined_call_operand.vmem [shape: f32[1,32], index: 10, kind: input, shape index: {}]   ;;  %s5295_s11 = inlined_call_operand.hbm [shape: f32[4,32], index: 11, kind: output, shape index: {}]  }
   0x1   :  { %17 = vsyncpa [#allocation6], 0 }
   0x2   :  { %18 = vsyncpa [#allocation9], 0 }
   0x3   :  { %19 = vsyncpa [#allocation12], 0 }
   0x4   :  { %20 = vsyncpa [#allocation4], 0  ;;  %s4338_s17 = smov [#allocation5]   ;;  %s4339_s19 = smov [#allocation8]  }
   0x5   :  { %s39_s18 = sshll.u32 %s4338_s17, 4  ;;  %s62_s20 = sshll.u32 %s4339_s19, 4  ;;  %s40_s18 = int_to_ptr.vmem [resolvable:$true] %s39_s18  ;;  %s4413_s20 = int_to_ptr.vmem [resolvable:$true] %s62_s20 }
   0x6   :  { %s4152_s23 = scalar_lea.hbm %s5285_s1, 64 }
   0x7   :  { %p4153_p0 = scmp.ne.s32.totalorder %s5285_s1, %s4152_s23  ;;  %p4156_p1 = scmp.lt.u32.totalorder %s4152_s23, %s5285_s1 }
   0x9   :  { %p4158_p2 = pnand %p4156_p1, %p4153_p0 }
   0xb   :  { %4161 = shalt.err (!%p4158_p2)
}
   0xc   :  { %s4162_s28 = scalar_lea.vmem %s40_s18, 64  ;;  %p4167_p4 = scmp.lt.s32.totalorder %s40_s18, %s40_s18 }
   0xd   :  { %p4163_p3 = scmp.ne.s32.totalorder %s40_s18, %s4162_s28  ;;  %p4168_p5 = scmp.lt.s32.totalorder %s4162_s28, %s4162_s28 }
   0xf   :  { %p4169_p6 = por %p4168_p5, %p4167_p4 }
  0x11   :  { %p4170_p7 = pnand %p4169_p6, %p4163_p3 }
  0x13   :  { %4173 = shalt.err (!%p4170_p7)
}
  0x14   :  { %42 = dma.hbm_to_vmem [thread:$0]  %s5285_s1, 64, %s40_s18, [#allocation6]  }
  0x15   :  { %s4174_s14 = scalar_lea.hbm %s5288_s4, 64 }
  0x16   :  { %p4175_p8 = scmp.ne.s32.totalorder %s5288_s4, %s4174_s14  ;;  %p4178_p9 = scmp.lt.u32.totalorder %s4174_s14, %s5288_s4 }
  0x18   :  { %p4180_p10 = pnand %p4178_p9, %p4175_p8 }
  0x1a   :  { %4183 = shalt.err (!%p4180_p10)
}
  0x1b   :  { %s4184_s21 = scalar_lea.vmem %s4413_s20, 64  ;;  %p4189_p12 = scmp.lt.s32.totalorder %s4413_s20, %s4413_s20 }
  0x1c   :  { %p4185_p11 = scmp.ne.s32.totalorder %s4413_s20, %s4184_s21  ;;  %p4190_p13 = scmp.lt.s32.totalorder %s4184_s21, %s4184_s21 }
  0x1e   :  { %p4191_p0 = por %p4190_p13, %p4189_p12 }
  0x20   :  { %p4192_p1 = pnand %p4191_p0, %p4185_p11 }
  0x22   :  { %4195 = shalt.err (!%p4192_p1)
}
  0x23   :  { %s4340_s1 = smov 16   ;;  %s4341_s18 = smov 1  }
  0x24   :  { %68 = dma.hbm_to_vmem [thread:$0]  %s5288_s4, 64, %s4413_s20, [#allocation9], %s4340_s1, %s4340_s1, %s4341_s18  }
  0x25   :  { %s4342_s24 = smov [#allocation11]   ;;  %s4343_s26 = smov [#allocation2]  }
  0x26   :  { %s88_s25 = sshll.u32 %s4342_s24, 4  ;;  %s26_s27 = sshll.u32 %s4343_s26, 4  ;;  %s89_s25 = int_to_ptr.vmem [resolvable:$true] %s88_s25  ;;  %s4447_s27 = int_to_ptr.vmem [resolvable:$true] %s26_s27 }
  0x27   :  { %s4196_s30 = scalar_lea.hbm %s5291_s7, 64 }
  0x28   :  { %p4197_p2 = scmp.ne.s32.totalorder %s5291_s7, %s4196_s30  ;;  %p4200_p3 = scmp.lt.u32.totalorder %s4196_s30, %s5291_s7 }
  0x2a   :  { %p4202_p4 = pnand %p4200_p3, %p4197_p2 }
  0x2c   :  { %4205 = shalt.err (!%p4202_p4)
}
  0x2d   :  { %s4206_s4 = scalar_lea.vmem %s89_s25, 64  ;;  %p4211_p6 = scmp.lt.s32.totalorder %s89_s25, %s89_s25 }
  0x2e   :  { %p4207_p5 = scmp.ne.s32.totalorder %s89_s25, %s4206_s4  ;;  %p4212_p7 = scmp.lt.s32.totalorder %s4206_s4, %s4206_s4 }
  0x30   :  { %p4213_p8 = por %p4212_p7, %p4211_p6 }
  0x32   :  { %p4214_p9 = pnand %p4213_p8, %p4207_p5 }
  0x34   :  { %4217 = shalt.err (!%p4214_p9)
}
  0x35   :  { %94 = dma.hbm_to_vmem [thread:$0]  %s5291_s7, 64, %s89_s25, [#allocation12], %s4340_s1, %s4340_s1, %s4341_s18  }
  0x36   :  { %s4218_s21 = scalar_lea.hbm %s5284_s0, 1024 }
  0x37   :  { %p4219_p10 = scmp.ne.s32.totalorder %s5284_s0, %s4218_s21  ;;  %p4222_p11 = scmp.lt.u32.totalorder %s4218_s21, %s5284_s0 }
  0x39   :  { %p4224_p12 = pnand %p4222_p11, %p4219_p10 }
  0x3b   :  { %4227 = shalt.err (!%p4224_p12)
}
  0x3c   :  { %s4228_s28 = scalar_lea.vmem %s4447_s27, 1024  ;;  %p4233_p0 = scmp.lt.s32.totalorder %s4447_s27, %s4447_s27 }
  0x3d   :  { %p4229_p13 = scmp.ne.s32.totalorder %s4447_s27, %s4228_s28  ;;  %p4234_p1 = scmp.lt.s32.totalorder %s4228_s28, %s4228_s28 }
  0x3f   :  { %p4235_p2 = por %p4234_p1, %p4233_p0 }
  0x41   :  { %p4236_p3 = pnand %p4235_p2, %p4229_p13 }
  0x43   :  { %4239 = shalt.err (!%p4236_p3)
}
  0x44   :  { %s4344_s7 = smov 128   ;;  %s4345_s25 = smov 8  }
  0x45   :  { %32 = dma.hbm_to_vmem [thread:$0]  %s5284_s0, 1024, %s4447_s27, [#allocation3], %s4344_s7, %s4344_s7, %s4345_s25  }
  0x46   :  { %s4346_s12 = smov [#allocation7]   ;;  %s4347_s14 = smov [#allocation10]  }
  0x47   :  { %s48_s13 = sshll.u32 %s4346_s12, 4  ;;  %s76_s15 = sshll.u32 %s4347_s14, 4  ;;  %s49_s13 = int_to_ptr.vmem [resolvable:$true] %s48_s13  ;;  %s4481_s15 = int_to_ptr.vmem [resolvable:$true] %s76_s15 }
  0x48   :  { %s4240_s16 = scalar_lea.hbm %s5286_s2, 1024 }
  0x49   :  { %p4241_p4 = scmp.ne.s32.totalorder %s5286_s2, %s4240_s16  ;;  %p4244_p5 = scmp.lt.u32.totalorder %s4240_s16, %s5286_s2 }
  0x4b   :  { %p4246_p6 = pnand %p4244_p5, %p4241_p4 }
  0x4d   :  { %4249 = shalt.err (!%p4246_p6)
}
  0x4e   :  { %s4250_s0 = scalar_lea.vmem %s49_s13, 1024  ;;  %p4255_p8 = scmp.lt.s32.totalorder %s49_s13, %s49_s13 }
  0x4f   :  { %p4251_p7 = scmp.ne.s32.totalorder %s49_s13, %s4250_s0  ;;  %p4256_p9 = scmp.lt.s32.totalorder %s4250_s0, %s4250_s0 }
  0x51   :  { %p4257_p10 = por %p4256_p9, %p4255_p8 }
  0x53   :  { %p4258_p11 = pnand %p4257_p10, %p4251_p7 }
  0x55   :  { %4261 = shalt.err (!%p4258_p11)
}
  0x56   :  { %54 = dma.hbm_to_vmem [thread:$0]  %s5286_s2, 1024, %s49_s13, [#allocation6], %s4344_s7, %s4344_s7, %s4345_s25  }
  0x57   :  { %s4262_s28 = scalar_lea.hbm %s5290_s6, 64 }
  0x58   :  { %p4263_p12 = scmp.ne.s32.totalorder %s5290_s6, %s4262_s28  ;;  %p4266_p13 = scmp.lt.u32.totalorder %s4262_s28, %s5290_s6 }
  0x5a   :  { %p4268_p0 = pnand %p4266_p13, %p4263_p12 }
  0x5c   :  { %4271 = shalt.err (!%p4268_p0)
}
  0x5d   :  { %s4272_s4 = scalar_lea.vmem %s4481_s15, 64  ;;  %p4277_p2 = scmp.lt.s32.totalorder %s4481_s15, %s4481_s15 }
  0x5e   :  { %p4273_p1 = scmp.ne.s32.totalorder %s4481_s15, %s4272_s4  ;;  %p4278_p3 = scmp.lt.s32.totalorder %s4272_s4, %s4272_s4 }
  0x60   :  { %p4279_p4 = por %p4278_p3, %p4277_p2 }
  0x62   :  { %p4280_p5 = pnand %p4279_p4, %p4273_p1 }
  0x64   :  { %4283 = shalt.err (!%p4280_p5)
}
  0x65   :  { %82 = dma.hbm_to_vmem [thread:$0]  %s5290_s6, 64, %s4481_s15, [#allocation9], %s4340_s1, %s4340_s1, %s4341_s18  }
  0x66   :  { %s4348_s25 = smov [#allocation13]   ;;  %s4284_s17 = scalar_lea.hbm %s5292_s8, 64 }
  0x67   :  { %s100_s13 = sshll.u32 %s4348_s25, 4  ;;  %p4285_p6 = scmp.ne.s32.totalorder %s5292_s8, %s4284_s17  ;;  %s101_s13 = int_to_ptr.vmem [resolvable:$true] %s100_s13 }
  0x68   :  { %p4288_p7 = scmp.lt.u32.totalorder %s4284_s17, %s5292_s8 }
  0x6a   :  { %p4290_p8 = pnand %p4288_p7, %p4285_p6 }
  0x6c   :  { %4293 = shalt.err (!%p4290_p8)
}
  0x6d   :  { %s4294_s27 = scalar_lea.vmem %s101_s13, 64  ;;  %p4299_p10 = scmp.lt.s32.totalorder %s101_s13, %s101_s13 }
  0x6e   :  { %p4295_p9 = scmp.ne.s32.totalorder %s101_s13, %s4294_s27  ;;  %p4300_p11 = scmp.lt.s32.totalorder %s4294_s27, %s4294_s27 }
  0x70   :  { %p4301_p12 = por %p4300_p11, %p4299_p10 }
  0x72   :  { %p4302_p13 = pnand %p4301_p12, %p4295_p9 }
  0x74   :  { %4305 = shalt.err (!%p4302_p13)
}
  0x75   :  { %106 = dma.hbm_to_vmem [thread:$0]  %s5292_s8, 64, %s101_s13, [#allocation12], %s4340_s1, %s4340_s1, %s4341_s18  }
  0x76   :  { %4328 = dma.done.wait [#allocation3], 1024  }
  0x77   :  { %4329 = vsyncadd [#allocation3], 4294966272 }
  0x78   :  { %4330 = dma.done.wait [#allocation6], 1088  }
  0x79   :  { %4331 = vsyncadd [#allocation6], 4294966208 }
  0x7a   :  { %4332 = dma.done.wait [#allocation9], 128  }
  0x7b   :  { %4333 = vsyncadd [#allocation9], 4294967168 }
  0x7c   :  { %4334 = dma.done.wait [#allocation12], 128  }
  0x7d   :  { %4335 = vsyncadd [#allocation12], 4294967168  ;;  %v4349_v0 = vmov 0.0|0.0   ;;  %vm4350_vm0 = vmmov 0   ;;  %v4351_v1 = vmov 0.0   ;;  %v4533_v2 = vld [vmem:[#allocation7] sm:$0xff] }
  0x7e   :  { %3816 = vmatprep.subr.bf16.mxu0 %v4349_v0  ;;  %3306 = vmatprep.mubr.msk.f32.mxu0 %vm4350_vm0, %v4351_v1  ;;  %v4535_v3 = vld [vmem:[#allocation7 + $0x8] sm:$0xff]  ;;  %v4537_v4 = vld [vmem:[#allocation7 + $0x10] sm:$0xff]  ;;  %vm149_vm1 = vcmask 523264   ;;  %v4541_v6 = vld [vmem:[#allocation7 + $0x18] sm:$0xff]  ;;  %s4352_s6 = smov [#allocation14]   ;;  %vm2785_vm2 = vcmask 257024  }
  0x7f   :  { %v3817_v5 = vpack.c.bf16 %v4535_v3, %v4533_v2  ;;  %v3820_v7 = vpack.c.bf16 %v4541_v6, %v4537_v4  ;;  %v4545_v8 = vld [vmem:[#allocation7 + $0x20] sm:$0xff]  ;;  %v4547_v9 = vld [vmem:[#allocation7 + $0x28] sm:$0xff]  ;;  %v4556_v12 = vld [vmem:[#allocation7 + $0x30] sm:$0xff]  ;;  %s2793_s15 = sshll.u32 %s4352_s6, 4  ;;  %s2794_s15 = int_to_ptr.vmem [resolvable:$true] %s2793_s15 }
  0x80   :  { %v4549_v10 = vld [vmem:[#allocation2] sm:$0xff]  ;;  %v3823_v11 = vpack.c.bf16 %v4547_v9, %v4545_v8  ;;  %v369_v16 = vld [vmem:[%s5287_s3 + $0x8] sm:$0xff]  ;;  %v370_v18 = vld [vmem:[%s5287_s3 + $0x10] sm:$0xff]  ;;  %s4306_s8 = scalar_lea.vmem %s2794_s15, 64  ;;  %p4311_p1 = scmp.lt.s32.totalorder %s2794_s15, %s2794_s15 }
  0x81   :  { %3829 = vmatprep.subr.bf16.mxu1 %v3817_v5  ;;  %3325 = vmatprep.mubr.msk.f32.mxu1 %vm149_vm1, %v4549_v10  ;;  %v4558_v13 = vld [vmem:[#allocation7 + $0x38] sm:$0xff]  ;;  %v4576_v20 = vld [vmem:[#allocation2 + $0x8] sm:$0xff]  ;;  %v4580_v22 = vld [vmem:[#allocation2 + $0x10] sm:$0xff]  ;;  %p4307_p0 = scmp.ne.s32.totalorder %s2794_s15, %s4306_s8  ;;  %p4312_p2 = scmp.lt.s32.totalorder %s4306_s8, %s4306_s8 }
  0x82   :  { %3831 = vmatpush3.bf16.msra.mxu1 %v3817_v5  ;;  %3818 = vmatpush3.bf16.msra.mxu0 %v3817_v5  ;;  %v3826_v14 = vpack.c.bf16 %v4558_v13, %v4556_v12  ;;  %v368_v15 = vld [vmem:[%s5287_s3] sm:$0xff]  ;;  %v371_v19 = vld [vmem:[%s5287_s3 + $0x18] sm:$0xff]  ;;  %v373_v25 = vld [vmem:[%s5287_s3 + $0x28] sm:$0xff] }
  0x83   :  { %3833 = vmatprep.subr.bf16.mxu1 %v3820_v7  ;;  %3819 = vmatprep.subr.bf16.mxu0 %v4349_v0  ;;  %v3844_v17 = vpack.c.bf16 %v369_v16, %v368_v15  ;;  %v4578_v21 = vld [vmem:[#allocation5] sm:$0xf]  ;;  %v3848_v23 = vpack.c.bf16 %v371_v19, %v370_v18  ;;  %v4594_v26 = vld [vmem:[#allocation2 + $0x18] sm:$0xff]  ;;  %v4602_v29 = vld [vmem:[#allocation2 + $0x28] sm:$0xff]  ;;  %p4313_p3 = por %p4312_p2, %p4311_p1 }
  0x84   :  { %v372_v24 = vld [vmem:[%s5287_s3 + $0x20] sm:$0xff]  ;;  %v4604_v30 = vld [vmem:[#allocation2 + $0x30] sm:$0xff]  ;;  %v4610_v31 = vld [vmem:[#allocation2 + $0x38] sm:$0xff] }
  0x85   :  { %v4596_v27 = vld [vmem:[#allocation2 + $0x20] sm:$0xff]  ;;  %v3852_v28 = vpack.c.bf16 %v373_v25, %v372_v24  ;;  %v374_v32 = vld [vmem:[%s5287_s3 + $0x30] sm:$0xff]  ;;  %v375_v33 = vld [vmem:[%s5287_s3 + $0x38] sm:$0xff]  ;;  %p4314_p4 = pnand %p4313_p3, %p4307_p0 }
  0x86   :  { %3835 = vmatpush3.bf16.msra.mxu1 %v3820_v7  ;;  %3821 = vmatpush3.bf16.msra.mxu0 %v3820_v7  ;;  %v3856_v34 = vpack.c.bf16 %v375_v33, %v374_v32  ;;  %v520_v35 = vld [vmem:[%s5289_s5] sm:$0xff]  ;;  %v521_v36 = vld [vmem:[%s5289_s5 + $0x8] sm:$0xff]  ;;  %v522_v37 = vld [vmem:[%s5289_s5 + $0x10] sm:$0xff] }
  0x87   :  { %3837 = vmatprep.subr.bf16.mxu1 %v3823_v11  ;;  %3822 = vmatprep.subr.bf16.mxu0 %v4349_v0  ;;  %v3860_v38 = vpack.c.bf16 %v521_v36, %v520_v35  ;;  %v523_v39 = vld [vmem:[%s5289_s5 + $0x18] sm:$0xff]  ;;  %v524_v41 = vld [vmem:[%s5289_s5 + $0x20] sm:$0xff]  ;;  %v525_v42 = vld [vmem:[%s5289_s5 + $0x28] sm:$0xff] }
  0x88   :  { %v3864_v40 = vpack.c.bf16 %v523_v39, %v522_v37  ;;  %v3868_v43 = vpack.c.bf16 %v525_v42, %v524_v41  ;;  %v526_v62 = vld [vmem:[%s5289_s5 + $0x30] sm:$0xff]  ;;  %v527_v63 = vld [vmem:[%s5289_s5 + $0x38] sm:$0xff]  ;;  %v2835_v37 = vld [vmem:[%s5293_s9 + $0x40] sm:$0xff] }
  0x89   :  { %v2838_v41 = vld [vmem:[%s5293_s9 + $0x58] sm:$0xff] }
  0x8a   :  { %3839 = vmatpush3.bf16.msra.mxu1 %v3823_v11  ;;  %3824 = vmatpush3.bf16.msra.mxu0 %v3823_v11 }
  0x8b   :  { %3841 = vmatprep.subr.bf16.mxu1 %v3826_v14  ;;  %3825 = vmatprep.subr.bf16.mxu0 %v4349_v0 }
  0x8e   :  { %3843 = vmatpush3.bf16.msra.mxu1 %v3826_v14  ;;  %3827 = vmatpush3.bf16.msra.mxu0 %v3826_v14 }
  0x8f   :  { %3845 = vmatprep.subr.bf16.mxu0 %v3844_v17  ;;  %3861 = vmatprep.subr.bf16.mxu1 %v3860_v38 }
  0x91   :  { %3326 = vmatmul.mubr.msk.f32.vlgmr.msra.gmra.mrb[0].mxu1 %vm149_vm1, %v4576_v20  ;;  %3307 = vmatmul.mubr.msk.f32.vlgmr.msra.gmra.mrb[0].mxu0 %vm149_vm1, %v4578_v21 }
  0x92   :  { %3328 = vmatprep.mubr.msk.f32.mxu1 %vm149_vm1, %v4580_v22  ;;  %3847 = vmatpush3.bf16.msra.mxu0 %v3844_v17 }
  0x93   :  { %3849 = vmatprep.subr.bf16.mxu0 %v3848_v23  ;;  %3863 = vmatpush3.bf16.msra.mxu1 %v3860_v38  ;;  %v2836_v38 = vld [vmem:[%s5293_s9 + $0x48] sm:$0xff] }
  0x94   :  { %3865 = vmatprep.subr.bf16.mxu1 %v3864_v40  ;;  %v3889_v39 = vpack.c.bf16 %v2836_v38, %v2835_v37 }
  0x95   :  { %3329 = vmatmul.mubr.msk.f32.gmra.mrb[2].mxu1 %vm149_vm1, %v4594_v26 }
  0x96   :  { %3331 = vmatprep.mubr.msk.f32.mxu1 %vm149_vm1, %v4596_v27  ;;  %3851 = vmatpush3.bf16.msra.mxu0 %v3848_v23 }
  0x97   :  { %3853 = vmatprep.subr.bf16.mxu0 %v3852_v28  ;;  %3867 = vmatpush3.bf16.msra.mxu1 %v3864_v40  ;;  %v2837_v40 = vld [vmem:[%s5293_s9 + $0x50] sm:$0xff] }
  0x98   :  { %3869 = vmatprep.subr.bf16.mxu1 %v3868_v43  ;;  %v3892_v42 = vpack.c.bf16 %v2838_v41, %v2837_v40 }
  0x99   :  { %3332 = vmatmul.mubr.msk.f32.gmra.mrb[4].mxu1 %vm149_vm1, %v4602_v29 }
  0x9a   :  { %3334 = vmatprep.mubr.msk.f32.mxu1 %vm149_vm1, %v4604_v30  ;;  %3855 = vmatpush3.bf16.msra.mxu0 %v3852_v28 }
  0x9b   :  { %3857 = vmatprep.subr.bf16.mxu0 %v3856_v34  ;;  %3871 = vmatpush3.bf16.msra.mxu1 %v3868_v43  ;;  %v2839_v43 = vld [vmem:[%s5293_s9 + $0x60] sm:$0xff] }
  0x9d   :  { %3335 = vmatmul.mubr.msk.f32.gmra.mrb[6].mxu1 %vm149_vm1, %v4610_v31 }
  0x9e   :  { %3859 = vmatpush3.bf16.msra.mxu0 %v3856_v34 }
  0x9f   :  { %3876 = vmatprep.subr.bf16.mxu0 %v4349_v0 }
 0x164   :  { %v3327_v44 = vpop.f32.mrb[0].mxu1  ;;  %v4639_v45 = vpop.f32.mrb[0].mxu0 }
 0x165   :  { %v321_v46 = vpop.f32.mrb[1].mxu1  ;;  %v3308_v47 = vpop.f32.mrb[1].mxu0  ;;  %v361_v49 = vadd.f32 %v3327_v44, %v4535_v3  ;;  %v2814_v3 = vld [vmem:[#allocation8] ss:$0 sm:$0xff]  ;;  %v2840_v44 = vld [vmem:[%s5293_s9 + $0x68] sm:$0xff] }
 0x166   :  { %v360_v48 = vadd.f32 %v321_v46, %v4533_v2  ;;  %v3872_v2 = vpack.c.bf16 %v527_v63, %v526_v62  ;;  %v3895_v46 = vpack.c.bf16 %v2840_v44, %v2839_v43  ;;  %v2841_v47 = vld [vmem:[%s5293_s9 + $0x70] sm:$0xff] }
 0x168   :  { %v3330_v50 = vpop.f32.mrb[2].mxu1  ;;  %3353 = vmatprep.mubr.msk.f32.mxu0 %vm149_vm1, %v360_v48  ;;  %3873 = vmatprep.subr.bf16.mxu1 %v3872_v2  ;;  %v2842_v48 = vld [vmem:[%s5293_s9 + $0x78] sm:$0xff] }
 0x169   :  { %v331_v51 = vpop.f32.mrb[3].mxu1  ;;  %3354 = vmatmul.mubr.msk.f32.vlgmr.msra.gmra.mrb[2].mxu0 %vm149_vm1, %v361_v49  ;;  %v363_v53 = vadd.f32 %v3330_v50, %v4541_v6  ;;  %3875 = vmatpush3.bf16.msra.mxu1 %v3872_v2  ;;  %v3898_v49 = vpack.c.bf16 %v2842_v48, %v2841_v47  ;;  %v2823_v50 = vld [vmem:[#allocation10] ss:$0 sm:$0xff] }
 0x16a   :  { %v362_v52 = vadd.f32 %v331_v51, %v4537_v4  ;;  %3888 = vmatprep.subr.bf16.mxu1 %v4349_v0 }
 0x16c   :  { %v3333_v54 = vpop.f32.mrb[4].mxu1  ;;  %3356 = vmatprep.mubr.msk.f32.mxu0 %vm149_vm1, %v362_v52 }
 0x16d   :  { %v341_v55 = vpop.f32.mrb[5].mxu1  ;;  %3357 = vmatmul.mubr.msk.f32.gmra.mrb[4].mxu0 %vm149_vm1, %v363_v53  ;;  %v365_v57 = vadd.f32 %v3333_v54, %v4547_v9  ;;  %v2832_v54 = vld [vmem:[#allocation11] ss:$0 sm:$0xff] }
 0x16e   :  { %v364_v56 = vadd.f32 %v341_v55, %v4545_v8 }
 0x170   :  { %v3336_v58 = vpop.f32.mrb[6].mxu1  ;;  %3359 = vmatprep.mubr.msk.f32.mxu0 %vm149_vm1, %v364_v56 }
 0x171   :  { %v351_v59 = vpop.f32.mrb[7].mxu1  ;;  %3360 = vmatmul.mubr.msk.f32.gmra.mrb[6].mxu0 %vm149_vm1, %v365_v57  ;;  %v367_v61 = vadd.f32 %v3336_v58, %v4558_v13  ;;  %v2833_v57 = vld [vmem:[#allocation13] ss:$0 sm:$0xff] }
 0x172   :  { %v366_v60 = vadd.f32 %v351_v59, %v4556_v12 }
 0x174   :  { %3362 = vmatprep.mubr.msk.f32.mxu0 %vm149_vm1, %v366_v60 }
 0x175   :  { %3363 = vmatmul.mubr.msk.f32.gmra.mrb[8].mxu0 %vm149_vm1, %v367_v61 }
 0x176   :  { %3409 = vmatprep.mubr.msk.f32.mxu0 %vm4350_vm0, %v4351_v1 }
 0x23c   :  { %v3355_v4 = vpop.f32.mrb[2].mxu0 }
 0x23d   :  { %v479_v5 = vadd.f32 %v3355_v4, %v2814_v3  ;;  %v473_v6 = vpop.f32.mrb[3].mxu0 }
 0x23e   :  { %v474_v7 = vadd.f32 %v2814_v3, %v473_v6 }
 0x23f   :  { %v513_v11 = vmax.f32 %v479_v5, 0.0 }
 0x240   :  { %v512_v8 = vmax.f32 %v474_v7, 0.0  ;;  %v3358_v9 = vpop.f32.mrb[4].mxu0 }
 0x241   :  { %v489_v12 = vadd.f32 %v3358_v9, %v2814_v3  ;;  %v483_v13 = vpop.f32.mrb[5].mxu0 }
 0x242   :  { %v484_v14 = vadd.f32 %v2814_v3, %v483_v13  ;;  %3381 = vmatprep.mubr.msk.f32.mxu1 %vm149_vm1, %v512_v8 }
 0x243   :  { %3382 = vmatmul.mubr.msk.f32.vlgmr.msra.gmra.mrb[8].mxu1 %vm149_vm1, %v513_v11  ;;  %v515_v17 = vmax.f32 %v489_v12, 0.0 }
 0x244   :  { %v514_v15 = vmax.f32 %v484_v14, 0.0  ;;  %v3361_v16 = vpop.f32.mrb[6].mxu0  ;;  %3890 = vmatpush3.bf16.msra.mxu1 %v3889_v39 }
 0x245   :  { %v499_v18 = vadd.f32 %v3361_v16, %v2814_v3  ;;  %v493_v19 = vpop.f32.mrb[7].mxu0  ;;  %3891 = vmatprep.subr.bf16.mxu1 %v4349_v0 }
 0x246   :  { %v494_v23 = vadd.f32 %v2814_v3, %v493_v19  ;;  %3384 = vmatprep.mubr.msk.f32.mxu1 %vm149_vm1, %v514_v15 }
 0x247   :  { %3385 = vmatmul.mubr.msk.f32.gmra.mrb[10].mxu1 %vm149_vm1, %v515_v17  ;;  %v517_v28 = vmax.f32 %v499_v18, 0.0 }
 0x248   :  { %v516_v24 = vmax.f32 %v494_v23, 0.0  ;;  %v3364_v25 = vpop.f32.mrb[8].mxu0  ;;  %3893 = vmatpush3.bf16.msra.mxu1 %v3892_v42 }
 0x249   :  { %v509_v32 = vadd.f32 %v3364_v25, %v2814_v3  ;;  %v503_v33 = vpop.f32.mrb[9].mxu0  ;;  %3894 = vmatprep.subr.bf16.mxu1 %v4349_v0 }
 0x24a   :  { %v504_v34 = vadd.f32 %v2814_v3, %v503_v33  ;;  %3387 = vmatprep.mubr.msk.f32.mxu1 %vm149_vm1, %v516_v24 }
 0x24b   :  { %3388 = vmatmul.mubr.msk.f32.gmra.mrb[12].mxu1 %vm149_vm1, %v517_v28  ;;  %v519_v36 = vmax.f32 %v509_v32, 0.0 }
 0x24c   :  { %v518_v35 = vmax.f32 %v504_v34, 0.0  ;;  %3896 = vmatpush3.bf16.msra.mxu1 %v3895_v46 }
 0x24d   :  { %3897 = vmatprep.subr.bf16.mxu1 %v4349_v0 }
 0x24e   :  { %3390 = vmatprep.mubr.msk.f32.mxu1 %vm149_vm1, %v518_v35 }
 0x24f   :  { %3391 = vmatmul.mubr.msk.f32.gmra.mrb[14].mxu1 %vm149_vm1, %v519_v36 }
 0x250   :  { %3428 = vmatprep.mubr.msk.f32.mxu1 %vm4350_vm0, %v4351_v1  ;;  %3899 = vmatpush3.bf16.msra.mxu1 %v3898_v49 }
 0x316   :  { %v3383_v51 = vpop.f32.mrb[8].mxu1 }
 0x317   :  { %v631_v52 = vadd.f32 %v3383_v51, %v2823_v50  ;;  %v625_v53 = vpop.f32.mrb[9].mxu1 }
 0x318   :  { %v626_v55 = vadd.f32 %v2823_v50, %v625_v53  ;;  %v224_v53 = vld [vmem:[%s5293_s9 + $0x8] sm:$0xff] }
 0x319   :  { %v665_v56 = vmax.f32 %v631_v52, 0.0  ;;  %v223_v52 = vld [vmem:[%s5293_s9] sm:$0xff] }
 0x31a   :  { %v664_v58 = vmax.f32 %v626_v55, 0.0  ;;  %v3386_v59 = vpop.f32.mrb[10].mxu1  ;;  %v3901_v55 = vpack.c.bf16 %v224_v53, %v223_v52 }
 0x31b   :  { %v680_v60 = vmul.f32 %v2832_v54, %v665_v56  ;;  %v641_v61 = vadd.f32 %v3386_v59, %v2823_v50  ;;  %v635_v62 = vpop.f32.mrb[11].mxu1  ;;  %v225_v56 = vld [vmem:[%s5293_s9 + $0x10] sm:$0xff]  ;;  %v227_v59 = vld [vmem:[%s5293_s9 + $0x20] sm:$0xff] }
 0x31c   :  { %v679_v63 = vmul.f32 %v2832_v54, %v664_v58  ;;  %v636_v2 = vadd.f32 %v2823_v50, %v635_v62  ;;  %v229_v62 = vld [vmem:[%s5293_s9 + $0x30] sm:$0xff] }
 0x31d   :  { %v4703_v3 = vadd.f32 %v2833_v57, %v680_v60  ;;  %v667_v4 = vmax.f32 %v641_v61, 0.0  ;;  %v228_v60 = vld [vmem:[%s5293_s9 + $0x28] sm:$0xff] }
 0x31e   :  { %v4705_v5 = vadd.f32 %v2833_v57, %v679_v63  ;;  %v666_v6 = vmax.f32 %v636_v2, 0.0  ;;  %v3389_v7 = vpop.f32.mrb[12].mxu1  ;;  %v3907_v61 = vpack.c.bf16 %v228_v60, %v227_v59  ;;  %v230_v63 = vld [vmem:[%s5293_s9 + $0x38] sm:$0xff] }
 0x31f   :  { %v703_v8 = vmax.f32 %v4703_v3, 0.0  ;;  %v682_v9 = vmul.f32 %v2832_v54, %v667_v4  ;;  %v651_v11 = vadd.f32 %v3389_v7, %v2823_v50  ;;  %v645_v12 = vpop.f32.mrb[13].mxu1  ;;  %v3910_v2 = vpack.c.bf16 %v230_v63, %v229_v62 }
 0x320   :  { %v702_v13 = vmax.f32 %v4705_v5, 0.0  ;;  %v681_v14 = vmul.f32 %v2832_v54, %v666_v6  ;;  %v646_v15 = vadd.f32 %v2823_v50, %v645_v12  ;;  %v2855_v12 = vld [vmem:[%s5287_s3 + $0x50] sm:$0xff] }
 0x321   :  { %v4709_v16 = vadd.f32 %v2833_v57, %v682_v9  ;;  %v669_v17 = vmax.f32 %v651_v11, 0.0  ;;  %v2854_v11 = vld [vmem:[%s5287_s3 + $0x48] sm:$0xff] }
 0x322   :  { %v4711_v18 = vadd.f32 %v2833_v57, %v681_v14  ;;  %v668_v19 = vmax.f32 %v646_v15, 0.0  ;;  %v3392_v23 = vpop.f32.mrb[14].mxu1  ;;  %v3877_v24 = vpack.c.bf16 %v703_v8, %v702_v13  ;;  %v2856_v15 = vld [vmem:[%s5287_s3 + $0x58] sm:$0xff] }
 0x323   :  { %v705_v25 = vmax.f32 %v4709_v16, 0.0  ;;  %v684_v28 = vmul.f32 %v2832_v54, %v669_v17  ;;  %v661_v32 = vadd.f32 %v3392_v23, %v2823_v50  ;;  %v655_v33 = vpop.f32.mrb[15].mxu1  ;;  %v3932_v17 = vpack.c.bf16 %v2856_v15, %v2855_v12  ;;  %v2858_v23 = vld [vmem:[%s5287_s3 + $0x68] sm:$0xff] }
 0x324   :  { %v704_v34 = vmax.f32 %v4711_v18, 0.0  ;;  %v683_v35 = vmul.f32 %v2832_v54, %v668_v19  ;;  %v656_v36 = vadd.f32 %v2823_v50, %v655_v33  ;;  %3878 = vmatpush3.bf16.msra.mxu0 %v3877_v24  ;;  %3913 = vmatprep.subr.bf16.mxu1 %v3877_v24  ;;  %v2857_v19 = vld [vmem:[%s5287_s3 + $0x60] sm:$0xff] }
 0x325   :  { %v4719_v37 = vadd.f32 %v2833_v57, %v684_v28  ;;  %v671_v38 = vmax.f32 %v661_v32, 0.0  ;;  %3879 = vmatprep.subr.bf16.mxu0 %v4349_v0  ;;  %v2859_v28 = vld [vmem:[%s5287_s3 + $0x70] sm:$0xff]  ;;  %v2860_v32 = vld [vmem:[%s5287_s3 + $0x78] sm:$0xff] }
 0x326   :  { %v4722_v39 = vadd.f32 %v2833_v57, %v683_v35  ;;  %v670_v40 = vmax.f32 %v656_v36, 0.0  ;;  %v3880_v41 = vpack.c.bf16 %v705_v25, %v704_v34  ;;  %v3940_v33 = vpack.c.bf16 %v2860_v32, %v2859_v28  ;;  %v2870_v35 = vld [vmem:[%s5289_s5 + $0x40] sm:$0xff]  ;;  %v2871_v36 = vld [vmem:[%s5289_s5 + $0x48] sm:$0xff] }
 0x327   :  { %v707_v42 = vmax.f32 %v4719_v37, 0.0  ;;  %v686_v43 = vmul.f32 %v2832_v54, %v671_v38  ;;  %v2872_v38 = vld [vmem:[%s5289_s5 + $0x50] sm:$0xff]  ;;  %v2877_v37 = vld [vmem:[%s5289_s5 + $0x78] sm:$0xff] }
 0x328   :  { %v706_v44 = vmax.f32 %v4722_v39, 0.0  ;;  %v685_v46 = vmul.f32 %v2832_v54, %v670_v40  ;;  %3881 = vmatpush3.bf16.msra.mxu0 %v3880_v41  ;;  %v3944_v40 = vpack.c.bf16 %v2871_v36, %v2870_v35 }
 0x329   :  { %v4730_v47 = vadd.f32 %v2833_v57, %v686_v43  ;;  %3882 = vmatprep.subr.bf16.mxu0 %v4349_v0 }
 0x32a   :  { %v4733_v48 = vadd.f32 %v2833_v57, %v685_v46  ;;  %v3883_v49 = vpack.c.bf16 %v707_v42, %v706_v44  ;;  %v226_v57 = vld [vmem:[%s5293_s9 + $0x18] sm:$0xff]  ;;  %v2874_v46 = vld [vmem:[%s5289_s5 + $0x60] sm:$0xff] }
 0x32b   :  { %v709_v50 = vmax.f32 %v4730_v47, 0.0  ;;  %v3904_v58 = vpack.c.bf16 %v226_v57, %v225_v56 }
 0x32c   :  { %v708_v51 = vmax.f32 %v4733_v48, 0.0  ;;  %3884 = vmatpush3.bf16.msra.mxu0 %v3883_v49 }
 0x32d   :  { %3885 = vmatprep.subr.bf16.mxu0 %v4349_v0 }
 0x32e   :  { %v3886_v54 = vpack.c.bf16 %v709_v50, %v708_v51 }
 0x330   :  { %3887 = vmatpush3.bf16.msra.mxu0 %v3886_v54 }
 0x331   :  { %3900 = vmatprep.subr.bf16.mxu0 %v4349_v0 }
 0x333   :  { %3410 = vmatmul.mubr.msk.f32.vlgmr.msra.gmra.mrb[10].mxu0 %vm149_vm1, %v4578_v21 }
 0x334   :  { %3902 = vmatpush3.bf16.msra.mxu0 %v3901_v55  ;;  %3447 = vmatprep.mubr.msk.f32.mxu0 %vm4350_vm0, %v4351_v1 }
 0x335   :  { %3903 = vmatprep.subr.bf16.mxu0 %v4349_v0 }
 0x338   :  { %3905 = vmatpush3.bf16.msra.mxu0 %v3904_v58 }
 0x339   :  { %3906 = vmatprep.subr.bf16.mxu0 %v4349_v0 }
 0x33c   :  { %3908 = vmatpush3.bf16.msra.mxu0 %v3907_v61 }
 0x33d   :  { %3909 = vmatprep.subr.bf16.mxu0 %v4349_v0 }
 0x340   :  { %3911 = vmatpush3.bf16.msra.mxu0 %v3910_v2 }
 0x343   :  { %3448 = vmatmul.mubr.msk.f32.vlgmr.msra.gmra.mrb[12].mxu0 %vm149_vm1, %v4639_v45  ;;  %v2853_v45 = vld [vmem:[%s5287_s3 + $0x40] sm:$0xff] }
 0x344   :  { %v3928_v14 = vpack.c.bf16 %v2854_v11, %v2853_v45 }
 0x346   :  { %3929 = vmatprep.subr.bf16.mxu0 %v3928_v14 }
 0x347   :  { %3931 = vmatpush3.bf16.msra.mxu0 %v3928_v14 }
 0x348   :  { %3933 = vmatprep.subr.bf16.mxu0 %v3932_v17 }
 0x34b   :  { %3935 = vmatpush3.bf16.msra.mxu0 %v3932_v17 }
 0x406   :  { %v776_v4 = vpop.f32.mrb[10].mxu0 }
 0x407   :  { %v3411_v6 = vpop.f32.mrb[11].mxu0  ;;  %3429 = vmatmul.mubr.msk.f32.vlgmr.msra.gmra.mrb[16].mxu1 %vm149_vm1, %v776_v4 }
 0x408   :  { %3915 = vmatpush3.bf16.msra.mxu1 %v3877_v24  ;;  %3466 = vmatprep.mubr.msk.f32.mxu1 %vm149_vm1, %v4549_v10  ;;  %v3936_v24 = vpack.c.bf16 %v2858_v23, %v2857_v19 }
 0x409   :  { %3917 = vmatprep.subr.bf16.mxu1 %v3880_v41 }
 0x40a   :  { %3937 = vmatprep.subr.bf16.mxu0 %v3936_v24 }
 0x40b   :  { %3939 = vmatpush3.bf16.msra.mxu0 %v3936_v24 }
 0x40c   :  { %3919 = vmatpush3.bf16.msra.mxu1 %v3880_v41  ;;  %3941 = vmatprep.subr.bf16.mxu0 %v3940_v33  ;;  %v2873_v41 = vld [vmem:[%s5289_s5 + $0x58] sm:$0xff] }
 0x40d   :  { %3921 = vmatprep.subr.bf16.mxu1 %v3883_v49  ;;  %v3948_v43 = vpack.c.bf16 %v2873_v41, %v2872_v38  ;;  %v2891_v41 = vld [vmem:[%s5293_s9 + $0x88] sm:$0xff] }
 0x40f   :  { %3943 = vmatpush3.bf16.msra.mxu0 %v3940_v33 }
 0x410   :  { %3923 = vmatpush3.bf16.msra.mxu1 %v3883_v49  ;;  %3960 = vmatprep.subr.bf16.mxu0 %v4349_v0  ;;  %v2875_v49 = vld [vmem:[%s5289_s5 + $0x68] sm:$0xff] }
 0x411   :  { %3925 = vmatprep.subr.bf16.mxu1 %v3886_v54  ;;  %v3952_v52 = vpack.c.bf16 %v2875_v49, %v2874_v46  ;;  %v2893_v49 = vld [vmem:[%s5293_s9 + $0x98] sm:$0xff] }
 0x414   :  { %3927 = vmatpush3.bf16.msra.mxu1 %v3886_v54 }
 0x415   :  { %3945 = vmatprep.subr.bf16.mxu1 %v3944_v40 }
 0x416   :  { %v931_v7 = vpop.f32.mrb[12].mxu0 }
 0x417   :  { %3467 = vmatmul.mubr.msk.f32.vlgmr.msra.gmra.mrb[18].mxu1 %vm149_vm1, %v4576_v20  ;;  %v3449_v9 = vpop.f32.mrb[13].mxu0 }
 0x418   :  { %3469 = vmatprep.mubr.msk.f32.mxu1 %vm149_vm1, %v4580_v22  ;;  %3947 = vmatpush3.bf16.msra.mxu1 %v3944_v40  ;;  %v2890_v40 = vld [vmem:[%s5293_s9 + $0x80] sm:$0xff] }
 0x419   :  { %3949 = vmatprep.subr.bf16.mxu1 %v3948_v43  ;;  %v3973_v46 = vpack.c.bf16 %v2891_v41, %v2890_v40 }
 0x41b   :  { %3470 = vmatmul.mubr.msk.f32.gmra.mrb[20].mxu1 %vm149_vm1, %v4594_v26 }
 0x41c   :  { %3472 = vmatprep.mubr.msk.f32.mxu1 %vm149_vm1, %v4596_v27  ;;  %3951 = vmatpush3.bf16.msra.mxu1 %v3948_v43  ;;  %v2892_v43 = vld [vmem:[%s5293_s9 + $0x90] sm:$0xff] }
 0x41d   :  { %3953 = vmatprep.subr.bf16.mxu1 %v3952_v52 }
 0x41f   :  { %3473 = vmatmul.mubr.msk.f32.gmra.mrb[22].mxu1 %vm149_vm1, %v4602_v29 }
 0x420   :  { %3475 = vmatprep.mubr.msk.f32.mxu1 %vm149_vm1, %v4604_v30  ;;  %3955 = vmatpush3.bf16.msra.mxu1 %v3952_v52  ;;  %v3976_v52 = vpack.c.bf16 %v2893_v49, %v2892_v43 }
 0x423   :  { %3476 = vmatmul.mubr.msk.f32.gmra.mrb[24].mxu1 %vm149_vm1, %v4610_v31 }
 0x4da   :  { %v858_v53 = vpop.f32.mrb[16].mxu1 }
 0x4db   :  { %v4840_v54 = vadd.f32 %v931_v7, %v858_v53  ;;  %v3430_v55 = vpop.f32.mrb[17].mxu1  ;;  %v2894_v53 = vld [vmem:[%s5293_s9 + $0xa0] sm:$0xff] }
 0x4dc   :  { %v2895_v55 = vld [vmem:[%s5293_s9 + $0xa8] sm:$0xff] }
 0x4ea   :  { %v3468_v56 = vpop.f32.mrb[18].mxu1 }
 0x4eb   :  { %v1001_v57 = vpop.f32.mrb[19].mxu1  ;;  %v1041_v59 = vadd.f32 %v3468_v56, %v703_v8  ;;  %v3979_v56 = vpack.c.bf16 %v2895_v55, %v2894_v53 }
 0x4ec   :  { %v1040_v58 = vadd.f32 %v1001_v57, %v702_v13  ;;  %v2896_v57 = vld [vmem:[%s5293_s9 + $0xb0] sm:$0xff] }
 0x4ee   :  { %v3471_v60 = vpop.f32.mrb[20].mxu1  ;;  %3494 = vmatprep.mubr.msk.f32.mxu0 %vm149_vm1, %v1040_v58  ;;  %v2897_v58 = vld [vmem:[%s5293_s9 + $0xb8] sm:$0xff] }
 0x4ef   :  { %v1011_v61 = vpop.f32.mrb[21].mxu1  ;;  %3495 = vmatmul.mubr.msk.f32.vlgmr.msra.gmra.mrb[14].mxu0 %vm149_vm1, %v1041_v59  ;;  %v1043_v63 = vadd.f32 %v3471_v60, %v705_v25  ;;  %v3982_v59 = vpack.c.bf16 %v2897_v58, %v2896_v57  ;;  %v2878_v60 = vld [vmem:[#allocation10 + $0x1] ss:$0 sm:$0xff] }
 0x4f0   :  { %v1042_v62 = vadd.f32 %v1011_v61, %v704_v34  ;;  %v2876_v34 = vld [vmem:[%s5289_s5 + $0x70] sm:$0xff] }
 0x4f1   :  { %v3956_v39 = vpack.c.bf16 %v2877_v37, %v2876_v34 }
 0x4f2   :  { %v3474_v2 = vpop.f32.mrb[22].mxu1  ;;  %3497 = vmatprep.mubr.msk.f32.mxu0 %vm149_vm1, %v1042_v62 }
 0x4f3   :  { %v1021_v5 = vpop.f32.mrb[23].mxu1  ;;  %3498 = vmatmul.mubr.msk.f32.gmra.mrb[16].mxu0 %vm149_vm1, %v1043_v63  ;;  %v1045_v8 = vadd.f32 %v3474_v2, %v707_v42  ;;  %3957 = vmatprep.subr.bf16.mxu1 %v3956_v39  ;;  %v2861_v42 = vld [vmem:[#allocation8 + $0x1] ss:$0 sm:$0xff]  ;;  %v2887_v2 = vld [vmem:[#allocation11 + $0x1] ss:$0 sm:$0xff] }
 0x4f4   :  { %v1044_v3 = vadd.f32 %v1021_v5, %v706_v44  ;;  %3959 = vmatpush3.bf16.msra.mxu1 %v3956_v39 }
 0x4f5   :  { %3972 = vmatprep.subr.bf16.mxu1 %v4349_v0 }
 0x4f6   :  { %v3477_v13 = vpop.f32.mrb[24].mxu1  ;;  %3500 = vmatprep.mubr.msk.f32.mxu0 %vm149_vm1, %v1044_v3 }
 0x4f7   :  { %v1031_v18 = vpop.f32.mrb[25].mxu1  ;;  %3501 = vmatmul.mubr.msk.f32.gmra.mrb[18].mxu0 %vm149_vm1, %v1045_v8  ;;  %v1047_v25 = vadd.f32 %v3477_v13, %v709_v50  ;;  %v2888_v8 = vld [vmem:[#allocation13 + $0x1] ss:$0 sm:$0xff] }
 0x4f8   :  { %v1046_v16 = vadd.f32 %v1031_v18, %v708_v51 }
 0x4fa   :  { %3503 = vmatprep.mubr.msk.f32.mxu0 %vm149_vm1, %v1046_v16 }
 0x4fb   :  { %3504 = vmatmul.mubr.msk.f32.gmra.mrb[20].mxu0 %vm149_vm1, %v1047_v25 }
 0x4fc   :  { %3550 = vmatprep.mubr.msk.f32.mxu0 %vm4350_vm0, %v4351_v1 }
 0x5c2   :  { %v3496_v44 = vpop.f32.mrb[14].mxu0 }
 0x5c3   :  { %v1161_v47 = vadd.f32 %v3496_v44, %v2861_v42  ;;  %v1155_v48 = vpop.f32.mrb[15].mxu0 }
 0x5c4   :  { %v1156_v50 = vadd.f32 %v2861_v42, %v1155_v48 }
 0x5c5   :  { %v1195_v6 = vmax.f32 %v1161_v47, 0.0 }
 0x5c6   :  { %v1194_v51 = vmax.f32 %v1156_v50, 0.0  ;;  %v3499_v4 = vpop.f32.mrb[16].mxu0 }
 0x5c7   :  { %v1171_v7 = vadd.f32 %v3499_v4, %v2861_v42  ;;  %v1165_v9 = vpop.f32.mrb[17].mxu0 }
 0x5c8   :  { %v1166_v45 = vadd.f32 %v2861_v42, %v1165_v9  ;;  %3522 = vmatprep.mubr.msk.f32.mxu1 %vm149_vm1, %v1194_v51 }
 0x5c9   :  { %3523 = vmatmul.mubr.msk.f32.vlgmr.msra.gmra.mrb[26].mxu1 %vm149_vm1, %v1195_v6  ;;  %v1197_v14 = vmax.f32 %v1171_v7, 0.0 }
 0x5ca   :  { %v1196_v11 = vmax.f32 %v1166_v45, 0.0  ;;  %v3502_v12 = vpop.f32.mrb[18].mxu0  ;;  %3974 = vmatpush3.bf16.msra.mxu1 %v3973_v46 }
 0x5cb   :  { %v1181_v15 = vadd.f32 %v3502_v12, %v2861_v42  ;;  %v1175_v17 = vpop.f32.mrb[19].mxu0  ;;  %3975 = vmatprep.subr.bf16.mxu1 %v4349_v0 }
 0x5cc   :  { %v1176_v19 = vadd.f32 %v2861_v42, %v1175_v17  ;;  %3525 = vmatprep.mubr.msk.f32.mxu1 %vm149_vm1, %v1196_v11 }
 0x5cd   :  { %3526 = vmatmul.mubr.msk.f32.gmra.mrb[28].mxu1 %vm149_vm1, %v1197_v14  ;;  %v1199_v28 = vmax.f32 %v1181_v15, 0.0 }
 0x5ce   :  { %v1198_v23 = vmax.f32 %v1176_v19, 0.0  ;;  %v3505_v24 = vpop.f32.mrb[20].mxu0  ;;  %3977 = vmatpush3.bf16.msra.mxu1 %v3976_v52 }
 0x5cf   :  { %v1191_v32 = vadd.f32 %v3505_v24, %v2861_v42  ;;  %v1185_v33 = vpop.f32.mrb[21].mxu0  ;;  %3978 = vmatprep.subr.bf16.mxu1 %v4349_v0 }
 0x5d0   :  { %v1186_v35 = vadd.f32 %v2861_v42, %v1185_v33  ;;  %3528 = vmatprep.mubr.msk.f32.mxu1 %vm149_vm1, %v1198_v23 }
 0x5d1   :  { %3529 = vmatmul.mubr.msk.f32.gmra.mrb[30].mxu1 %vm149_vm1, %v1199_v28  ;;  %v1201_v38 = vmax.f32 %v1191_v32, 0.0 }
 0x5d2   :  { %v1200_v36 = vmax.f32 %v1186_v35, 0.0  ;;  %3980 = vmatpush3.bf16.msra.mxu1 %v3979_v56 }
 0x5d3   :  { %3981 = vmatprep.subr.bf16.mxu1 %v4349_v0 }
 0x5d4   :  { %3531 = vmatprep.mubr.msk.f32.mxu1 %vm149_vm1, %v1200_v36 }
 0x5d5   :  { %3532 = vmatmul.mubr.msk.f32.gmra.mrb[32].mxu1 %vm149_vm1, %v1201_v38 }
 0x5d6   :  { %3569 = vmatprep.mubr.msk.f32.mxu1 %vm4350_vm0, %v4351_v1  ;;  %3983 = vmatpush3.bf16.msra.mxu1 %v3982_v59 }
 0x69c   :  { %v3524_v61 = vpop.f32.mrb[26].mxu1 }
 0x69d   :  { %v1315_v62 = vadd.f32 %v3524_v61, %v2878_v60  ;;  %v1309_v63 = vpop.f32.mrb[27].mxu1 }
 0x69e   :  { %v1310_v5 = vadd.f32 %v2878_v60, %v1309_v63 }
 0x69f   :  { %v1349_v3 = vmax.f32 %v1315_v62, 0.0 }
 0x6a0   :  { %v1348_v13 = vmax.f32 %v1310_v5, 0.0  ;;  %v3527_v18 = vpop.f32.mrb[28].mxu1  ;;  %v2913_v5 = vld [vmem:[%s5287_s3 + $0xb0] sm:$0xff] }
 0x6a1   :  { %v1365_v16 = vmul.f32 %v2887_v2, %v1349_v3  ;;  %v1325_v25 = vadd.f32 %v3527_v18, %v2878_v60  ;;  %v1319_v34 = vpop.f32.mrb[29].mxu1  ;;  %v2914_v3 = vld [vmem:[%s5287_s3 + $0xb8] sm:$0xff] }
 0x6a2   :  { %v1364_v37 = vmul.f32 %v2887_v2, %v1348_v13  ;;  %v1320_v39 = vadd.f32 %v2878_v60, %v1319_v34 }
 0x6a3   :  { %v4912_v42 = vadd.f32 %v2888_v8, %v1365_v16  ;;  %v1351_v44 = vmax.f32 %v1325_v25, 0.0 }
 0x6a4   :  { %v4914_v47 = vadd.f32 %v2888_v8, %v1364_v37  ;;  %v1350_v48 = vmax.f32 %v1320_v39, 0.0  ;;  %v3530_v50 = vpop.f32.mrb[30].mxu1 }
 0x6a5   :  { %v1389_v51 = vmax.f32 %v4912_v42, 0.0  ;;  %v1367_v4 = vmul.f32 %v2887_v2, %v1351_v44  ;;  %v1335_v6 = vadd.f32 %v3530_v50, %v2878_v60  ;;  %v1329_v7 = vpop.f32.mrb[31].mxu1 }
 0x6a6   :  { %v1388_v9 = vmax.f32 %v4914_v47, 0.0  ;;  %v1366_v45 = vmul.f32 %v2887_v2, %v1350_v48  ;;  %v1330_v11 = vadd.f32 %v2878_v60, %v1329_v7 }
 0x6a7   :  { %v4918_v12 = vadd.f32 %v2888_v8, %v1367_v4  ;;  %v1353_v14 = vmax.f32 %v1335_v6, 0.0 }
 0x6a8   :  { %v4920_v15 = vadd.f32 %v2888_v8, %v1366_v45  ;;  %v1352_v17 = vmax.f32 %v1330_v11, 0.0  ;;  %v3533_v19 = vpop.f32.mrb[32].mxu1  ;;  %v3961_v23 = vpack.c.bf16 %v1389_v51, %v1388_v9  ;;  %v2925_v45 = vld [vmem:[%s5289_s5 + $0x88] sm:$0xff]  ;;  %v2926_v11 = vld [vmem:[%s5289_s5 + $0x90] sm:$0xff] }
 0x6a9   :  { %v1391_v24 = vmax.f32 %v4918_v12, 0.0  ;;  %v1369_v28 = vmul.f32 %v2887_v2, %v1353_v14  ;;  %v1345_v32 = vadd.f32 %v3533_v19, %v2878_v60  ;;  %v1339_v33 = vpop.f32.mrb[33].mxu1  ;;  %v2927_v14 = vld [vmem:[%s5289_s5 + $0x98] sm:$0xff]  ;;  %v2929_v19 = vld [vmem:[%s5289_s5 + $0xa8] sm:$0xff] }
 0x6aa   :  { %v1390_v35 = vmax.f32 %v4920_v15, 0.0  ;;  %v1368_v36 = vmul.f32 %v2887_v2, %v1352_v17  ;;  %v1340_v38 = vadd.f32 %v2878_v60, %v1339_v33  ;;  %3962 = vmatpush3.bf16.msra.mxu0 %v3961_v23  ;;  %v4020_v15 = vpack.c.bf16 %v2927_v14, %v2926_v11  ;;  %v2928_v17 = vld [vmem:[%s5289_s5 + $0xa0] sm:$0xff] }
 0x6ab   :  { %v4928_v40 = vadd.f32 %v2888_v8, %v1369_v28  ;;  %v1355_v41 = vmax.f32 %v1345_v32, 0.0  ;;  %3963 = vmatprep.subr.bf16.mxu0 %v4349_v0  ;;  %v2931_v28 = vld [vmem:[%s5289_s5 + $0xb8] sm:$0xff] }
 0x6ac   :  { %v4931_v43 = vadd.f32 %v2888_v8, %v1368_v36  ;;  %v1354_v46 = vmax.f32 %v1340_v38, 0.0  ;;  %v3964_v49 = vpack.c.bf16 %v1391_v24, %v1390_v35  ;;  %v2915_v38 = vld [vmem:[#allocation8 + $0x2] ss:$0 sm:$0xff] }
 0x6ad   :  { %v1393_v52 = vmax.f32 %v4928_v40, 0.0  ;;  %v1371_v53 = vmul.f32 %v2887_v2, %v1355_v41 }
 0x6ae   :  { %v1392_v55 = vmax.f32 %v4931_v43, 0.0  ;;  %v1370_v56 = vmul.f32 %v2887_v2, %v1354_v46  ;;  %3965 = vmatpush3.bf16.msra.mxu0 %v3964_v49 }
 0x6af   :  { %v4939_v57 = vadd.f32 %v2888_v8, %v1371_v53  ;;  %3966 = vmatprep.subr.bf16.mxu0 %v4349_v0 }
 0x6b0   :  { %v4942_v58 = vadd.f32 %v2888_v8, %v1370_v56  ;;  %v3967_v59 = vpack.c.bf16 %v1393_v52, %v1392_v55  ;;  %v4012_v8 = vpack.c.bf16 %v2914_v3, %v2913_v5  ;;  %v2947_v3 = vld [vmem:[%s5293_s9 + $0xd8] sm:$0xff] }
 0x6b1   :  { %v1395_v60 = vmax.f32 %v4939_v57, 0.0 }
 0x6b2   :  { %v1394_v61 = vmax.f32 %v4942_v58, 0.0  ;;  %3968 = vmatpush3.bf16.msra.mxu0 %v3967_v59 }
 0x6b3   :  { %3969 = vmatprep.subr.bf16.mxu0 %v4349_v0 }
 0x6b4   :  { %v3970_v62 = vpack.c.bf16 %v1395_v60, %v1394_v61 }
 0x6b6   :  { %3971 = vmatpush3.bf16.msra.mxu0 %v3970_v62 }
 0x6b7   :  { %3985 = vmatprep.subr.bf16.mxu0 %v3961_v23 }
 0x6b9   :  { %3551 = vmatmul.mubr.msk.f32.vlgmr.msra.gmra.mrb[22].mxu0 %vm149_vm1, %v4578_v21 }
 0x6ba   :  { %3987 = vmatpush3.bf16.msra.mxu0 %v3961_v23  ;;  %3588 = vmatprep.mubr.msk.f32.mxu0 %vm149_vm1, %v4549_v10  ;;  %v2907_v10 = vld [vmem:[%s5287_s3 + $0x80] sm:$0xff]  ;;  %v4024_v23 = vpack.c.bf16 %v2929_v19, %v2928_v17 }
 0x6bb   :  { %3989 = vmatprep.subr.bf16.mxu0 %v3964_v49 }
 0x6be   :  { %3991 = vmatpush3.bf16.msra.mxu0 %v3964_v49 }
 0x6bf   :  { %3993 = vmatprep.subr.bf16.mxu0 %v3967_v59 }
 0x6c2   :  { %3995 = vmatpush3.bf16.msra.mxu0 %v3967_v59 }
 0x6c3   :  { %3997 = vmatprep.subr.bf16.mxu0 %v3970_v62 }
 0x6c6   :  { %3999 = vmatpush3.bf16.msra.mxu0 %v3970_v62 }
 0x6c9   :  { %3589 = vmatmul.mubr.msk.f32.vlgmr.msra.gmra.mrb[24].mxu0 %vm149_vm1, %v4576_v20  ;;  %v2908_v20 = vld [vmem:[%s5287_s3 + $0x88] sm:$0xff] }
 0x6ca   :  { %3591 = vmatprep.mubr.msk.f32.mxu0 %vm149_vm1, %v4580_v22  ;;  %v4000_v21 = vpack.c.bf16 %v2908_v20, %v2907_v10  ;;  %v2909_v22 = vld [vmem:[%s5287_s3 + $0x90] sm:$0xff] }
 0x6cc   :  { %4001 = vmatprep.subr.bf16.mxu1 %v4000_v21 }
 0x6cd   :  { %3592 = vmatmul.mubr.msk.f32.gmra.mrb[26].mxu0 %vm149_vm1, %v4594_v26  ;;  %v2910_v26 = vld [vmem:[%s5287_s3 + $0x98] sm:$0xff] }
 0x6ce   :  { %3594 = vmatprep.mubr.msk.f32.mxu0 %vm149_vm1, %v4596_v27  ;;  %v4004_v27 = vpack.c.bf16 %v2910_v26, %v2909_v22 }
 0x6d1   :  { %3595 = vmatmul.mubr.msk.f32.gmra.mrb[28].mxu0 %vm149_vm1, %v4602_v29 }
 0x6d2   :  { %3597 = vmatprep.mubr.msk.f32.mxu0 %vm149_vm1, %v4604_v30  ;;  %v2911_v30 = vld [vmem:[%s5287_s3 + $0xa0] sm:$0xff] }
 0x6d5   :  { %3598 = vmatmul.mubr.msk.f32.gmra.mrb[30].mxu0 %vm149_vm1, %v4610_v31  ;;  %v2912_v31 = vld [vmem:[%s5287_s3 + $0xa8] sm:$0xff] }
 0x6d6   :  { %v4008_v2 = vpack.c.bf16 %v2912_v31, %v2911_v30  ;;  %v2944_v31 = vld [vmem:[%s5293_s9 + $0xc0] sm:$0xff] }
 0x78c   :  { %v1462_v29 = vpop.f32.mrb[22].mxu0 }
 0x78d   :  { %v3552_v63 = vpop.f32.mrb[23].mxu0  ;;  %3570 = vmatmul.mubr.msk.f32.vlgmr.msra.gmra.mrb[34].mxu1 %vm149_vm1, %v1462_v29 }
 0x78e   :  { %4003 = vmatpush3.bf16.msra.mxu1 %v4000_v21  ;;  %v2945_v63 = vld [vmem:[%s5293_s9 + $0xc8] sm:$0xff] }
 0x78f   :  { %4005 = vmatprep.subr.bf16.mxu1 %v4004_v27  ;;  %v4045_v5 = vpack.c.bf16 %v2945_v63, %v2944_v31 }
 0x792   :  { %4007 = vmatpush3.bf16.msra.mxu1 %v4004_v27 }
 0x793   :  { %4009 = vmatprep.subr.bf16.mxu1 %v4008_v2 }
 0x796   :  { %4011 = vmatpush3.bf16.msra.mxu1 %v4008_v2  ;;  %v2946_v2 = vld [vmem:[%s5293_s9 + $0xd0] sm:$0xff] }
 0x797   :  { %4013 = vmatprep.subr.bf16.mxu1 %v4012_v8 }
 0x79a   :  { %4015 = vmatpush3.bf16.msra.mxu1 %v4012_v8  ;;  %v4048_v8 = vpack.c.bf16 %v2947_v3, %v2946_v2 }
 0x79b   :  { %4032 = vmatprep.subr.bf16.mxu1 %v4349_v0 }
 0x79c   :  { %v3590_v13 = vpop.f32.mrb[24].mxu0 }
 0x79d   :  { %v1615_v18 = vpop.f32.mrb[25].mxu0  ;;  %v1655_v25 = vadd.f32 %v3590_v13, %v1389_v51  ;;  %v2948_v13 = vld [vmem:[%s5293_s9 + $0xe0] sm:$0xff] }
 0x79e   :  { %v1654_v16 = vadd.f32 %v1615_v18, %v1388_v9  ;;  %v2924_v9 = vld [vmem:[%s5289_s5 + $0x80] sm:$0xff]  ;;  %v2949_v18 = vld [vmem:[%s5293_s9 + $0xe8] sm:$0xff] }
 0x79f   :  { %v4016_v12 = vpack.c.bf16 %v2925_v45, %v2924_v9 }
 0x7a0   :  { %v3593_v34 = vpop.f32.mrb[26].mxu0  ;;  %3616 = vmatprep.mubr.msk.f32.mxu1 %vm149_vm1, %v1654_v16  ;;  %v4051_v16 = vpack.c.bf16 %v2949_v18, %v2948_v13  ;;  %v5133_v13 = vld [vmem:[#allocation5] sm:$0xf] }
 0x7a1   :  { %v1625_v37 = vpop.f32.mrb[27].mxu0  ;;  %3617 = vmatmul.mubr.msk.f32.vlgmr.msra.gmra.mrb[36].mxu1 %vm149_vm1, %v1655_v25  ;;  %v1657_v44 = vadd.f32 %v3593_v34, %v1391_v24  ;;  %4017 = vmatprep.subr.bf16.mxu0 %v4016_v12  ;;  %v2930_v24 = vld [vmem:[%s5289_s5 + $0xb0] sm:$0xff]  ;;  %v2951_v34 = vld [vmem:[%s5293_s9 + $0xf8] sm:$0xff]  ;;  %v4144_v18 = vld [vmem:[#allocation2] sm:$0xff] }
 0x7a2   :  { %v1656_v39 = vadd.f32 %v1625_v37, %v1390_v35  ;;  %4019 = vmatpush3.bf16.msra.mxu0 %v4016_v12  ;;  %v4028_v32 = vpack.c.bf16 %v2931_v28, %v2930_v24  ;;  %v2950_v25 = vld [vmem:[%s5293_s9 + $0xf0] sm:$0xff] }
 0x7a3   :  { %4021 = vmatprep.subr.bf16.mxu0 %v4020_v15  ;;  %v4054_v37 = vpack.c.bf16 %v2951_v34, %v2950_v25  ;;  %v4146_v25 = vld [vmem:[#allocation2 + $0x10] sm:$0xff]  ;;  %v4147_v34 = vld [vmem:[#allocation2 + $0x18] sm:$0xff] }
 0x7a4   :  { %v3596_v48 = vpop.f32.mrb[28].mxu0  ;;  %3619 = vmatprep.mubr.msk.f32.mxu1 %vm149_vm1, %v1656_v39  ;;  %v2932_v39 = vld [vmem:[#allocation10 + $0x2] ss:$0 sm:$0xff] }
 0x7a5   :  { %v1635_v47 = vpop.f32.mrb[29].mxu0  ;;  %3620 = vmatmul.mubr.msk.f32.gmra.mrb[38].mxu1 %vm149_vm1, %v1657_v44  ;;  %v1659_v50 = vadd.f32 %v3596_v48, %v1393_v52 }
 0x7a6   :  { %v1658_v42 = vadd.f32 %v1635_v47, %v1392_v55  ;;  %4023 = vmatpush3.bf16.msra.mxu0 %v4020_v15 }
 0x7a7   :  { %4025 = vmatprep.subr.bf16.mxu0 %v4024_v23 }
 0x7a8   :  { %v3599_v51 = vpop.f32.mrb[30].mxu0  ;;  %3622 = vmatprep.mubr.msk.f32.mxu1 %vm149_vm1, %v1658_v42  ;;  %v2941_v42 = vld [vmem:[#allocation11 + $0x2] ss:$0 sm:$0xff] }
 0x7a9   :  { %v1645_v4 = vpop.f32.mrb[31].mxu0  ;;  %3623 = vmatmul.mubr.msk.f32.gmra.mrb[40].mxu1 %vm149_vm1, %v1659_v50  ;;  %v1661_v7 = vadd.f32 %v3599_v51, %v1395_v60 }
 0x7aa   :  { %v1660_v6 = vadd.f32 %v1645_v4, %v1394_v61  ;;  %4027 = vmatpush3.bf16.msra.mxu0 %v4024_v23  ;;  %v2942_v4 = vld [vmem:[#allocation13 + $0x2] ss:$0 sm:$0xff] }
 0x7ab   :  { %4029 = vmatprep.subr.bf16.mxu0 %v4028_v32 }
 0x7ac   :  { %3625 = vmatprep.mubr.msk.f32.mxu1 %vm149_vm1, %v1660_v6 }
 0x7ad   :  { %3626 = vmatmul.mubr.msk.f32.gmra.mrb[42].mxu1 %vm149_vm1, %v1661_v7 }
 0x7ae   :  { %3672 = vmatprep.mubr.msk.f32.mxu1 %vm4350_vm0, %v4351_v1  ;;  %4031 = vmatpush3.bf16.msra.mxu0 %v4028_v32 }
 0x7af   :  { %4044 = vmatprep.subr.bf16.mxu0 %v4349_v0 }
 0x860   :  { %v1544_v33 = vpop.f32.mrb[34].mxu1 }
 0x861   :  { %v5051_v35 = vadd.f32 %v1544_v33, %v4840_v54  ;;  %v3571_v36 = vpop.f32.mrb[35].mxu1 }
 0x874   :  { %v3618_v40 = vpop.f32.mrb[36].mxu1 }
 0x875   :  { %v1775_v41 = vadd.f32 %v3618_v40, %v2915_v38  ;;  %v1769_v43 = vpop.f32.mrb[37].mxu1 }
 0x876   :  { %v1770_v46 = vadd.f32 %v2915_v38, %v1769_v43 }
 0x877   :  { %v1809_v53 = vmax.f32 %v1775_v41, 0.0 }
 0x878   :  { %v1808_v49 = vmax.f32 %v1770_v46, 0.0  ;;  %v3621_v52 = vpop.f32.mrb[38].mxu1 }
 0x879   :  { %v1785_v55 = vadd.f32 %v3621_v52, %v2915_v38  ;;  %v1779_v56 = vpop.f32.mrb[39].mxu1 }
 0x87a   :  { %v1780_v57 = vadd.f32 %v2915_v38, %v1779_v56  ;;  %3644 = vmatprep.mubr.msk.f32.mxu0 %vm149_vm1, %v1808_v49 }
 0x87b   :  { %3645 = vmatmul.mubr.msk.f32.vlgmr.msra.gmra.mrb[32].mxu0 %vm149_vm1, %v1809_v53  ;;  %v1811_v54 = vmax.f32 %v1785_v55, 0.0 }
 0x87c   :  { %v1810_v58 = vmax.f32 %v1780_v57, 0.0  ;;  %v3624_v59 = vpop.f32.mrb[40].mxu1  ;;  %4046 = vmatpush3.bf16.msra.mxu0 %v4045_v5 }
 0x87d   :  { %v1795_v60 = vadd.f32 %v3624_v59, %v2915_v38  ;;  %v1789_v61 = vpop.f32.mrb[41].mxu1  ;;  %4047 = vmatprep.subr.bf16.mxu0 %v4349_v0 }
 0x87e   :  { %v1790_v62 = vadd.f32 %v2915_v38, %v1789_v61  ;;  %3647 = vmatprep.mubr.msk.f32.mxu0 %vm149_vm1, %v1810_v58 }
 0x87f   :  { %3648 = vmatmul.mubr.msk.f32.gmra.mrb[34].mxu0 %vm149_vm1, %v1811_v54  ;;  %v1813_v21 = vmax.f32 %v1795_v60, 0.0 }
 0x880   :  { %v1812_v10 = vmax.f32 %v1790_v62, 0.0  ;;  %v3627_v20 = vpop.f32.mrb[42].mxu1  ;;  %4049 = vmatpush3.bf16.msra.mxu0 %v4048_v8 }
 0x881   :  { %v1805_v22 = vadd.f32 %v3627_v20, %v2915_v38  ;;  %v1799_v26 = vpop.f32.mrb[43].mxu1  ;;  %4050 = vmatprep.subr.bf16.mxu0 %v4349_v0 }
 0x882   :  { %v1800_v27 = vadd.f32 %v2915_v38, %v1799_v26  ;;  %3650 = vmatprep.mubr.msk.f32.mxu0 %vm149_vm1, %v1812_v10 }
 0x883   :  { %3651 = vmatmul.mubr.msk.f32.gmra.mrb[36].mxu0 %vm149_vm1, %v1813_v21  ;;  %v1815_v30 = vmax.f32 %v1805_v22, 0.0 }
 0x884   :  { %v1814_v29 = vmax.f32 %v1800_v27, 0.0  ;;  %4052 = vmatpush3.bf16.msra.mxu0 %v4051_v16  ;;  %v4145_v16 = vld [vmem:[#allocation2 + $0x8] sm:$0xff] }
 0x885   :  { %4053 = vmatprep.subr.bf16.mxu0 %v4349_v0 }
 0x886   :  { %3653 = vmatprep.mubr.msk.f32.mxu0 %vm149_vm1, %v1814_v29 }
 0x887   :  { %3654 = vmatmul.mubr.msk.f32.gmra.mrb[38].mxu0 %vm149_vm1, %v1815_v30 }
 0x888   :  { %3691 = vmatprep.mubr.msk.f32.mxu0 %vm4350_vm0, %v4351_v1  ;;  %4055 = vmatpush3.bf16.msra.mxu0 %v4054_v37  ;;  %v4148_v37 = vld [vmem:[#allocation2 + $0x20] sm:$0xff] }
 0x94e   :  { %v3646_v44 = vpop.f32.mrb[32].mxu0 }
 0x94f   :  { %v1929_v48 = vadd.f32 %v3646_v44, %v2932_v39  ;;  %v1923_v47 = vpop.f32.mrb[33].mxu0  ;;  %v4150_v44 = vld [vmem:[#allocation2 + $0x30] sm:$0xff] }
 0x950   :  { %v1924_v50 = vadd.f32 %v2932_v39, %v1923_v47  ;;  %v2961_v47 = vld [vmem:[%s5287_s3 + $0xc0] sm:$0xff] }
 0x951   :  { %v1963_v51 = vmax.f32 %v1929_v48, 0.0  ;;  %v4151_v48 = vld [vmem:[#allocation2 + $0x38] sm:$0xff] }
 0x952   :  { %v1962_v6 = vmax.f32 %v1924_v50, 0.0  ;;  %v3649_v7 = vpop.f32.mrb[34].mxu0 }
 0x953   :  { %v1979_v9 = vmul.f32 %v2941_v42, %v1963_v51  ;;  %v1939_v45 = vadd.f32 %v3649_v7, %v2932_v39  ;;  %v1933_v11 = vpop.f32.mrb[35].mxu0  ;;  %v2963_v51 = vld [vmem:[%s5287_s3 + $0xd0] sm:$0xff] }
 0x954   :  { %v1978_v12 = vmul.f32 %v2941_v42, %v1962_v6  ;;  %v1934_v14 = vadd.f32 %v2932_v39, %v1933_v11 }
 0x955   :  { %v5090_v15 = vadd.f32 %v2942_v4, %v1979_v9  ;;  %v1965_v17 = vmax.f32 %v1939_v45, 0.0  ;;  %v2965_v9 = vld [vmem:[%s5287_s3 + $0xe0] sm:$0xff]  ;;  %v2966_v45 = vld [vmem:[%s5287_s3 + $0xe8] sm:$0xff] }
 0x956   :  { %v5092_v19 = vadd.f32 %v2942_v4, %v1978_v12  ;;  %v1964_v23 = vmax.f32 %v1934_v14, 0.0  ;;  %v3652_v24 = vpop.f32.mrb[36].mxu0  ;;  %v4080_v12 = vpack.c.bf16 %v2966_v45, %v2965_v9  ;;  %v2967_v14 = vld [vmem:[%s5287_s3 + $0xf0] sm:$0xff] }
 0x957   :  { %v2003_v28 = vmax.f32 %v5090_v15, 0.0  ;;  %v1981_v32 = vmul.f32 %v2941_v42, %v1965_v17  ;;  %v1949_v33 = vadd.f32 %v3652_v24, %v2932_v39  ;;  %v1943_v36 = vpop.f32.mrb[37].mxu0  ;;  %v2968_v17 = vld [vmem:[%s5287_s3 + $0xf8] sm:$0xff] }
 0x958   :  { %v2002_v38 = vmax.f32 %v5092_v19, 0.0  ;;  %v1980_v40 = vmul.f32 %v2941_v42, %v1964_v23  ;;  %v1944_v41 = vadd.f32 %v2932_v39, %v1943_v36  ;;  %v4084_v23 = vpack.c.bf16 %v2968_v17, %v2967_v14  ;;  %v3000_v14 = vld [vmem:[%s5293_s9 + $0x110] sm:$0xff] }
 0x959   :  { %v5096_v43 = vadd.f32 %v2942_v4, %v1981_v32  ;;  %v1967_v46 = vmax.f32 %v1949_v33, 0.0 }
 0x95a   :  { %v5098_v49 = vadd.f32 %v2942_v4, %v1980_v40  ;;  %v1966_v52 = vmax.f32 %v1944_v41, 0.0  ;;  %v3655_v53 = vpop.f32.mrb[38].mxu0  ;;  %v4033_v55 = vpack.c.bf16 %v2003_v28, %v2002_v38 }
 0x95b   :  { %v2005_v56 = vmax.f32 %v5096_v43, 0.0  ;;  %v1983_v57 = vmul.f32 %v2941_v42, %v1967_v46  ;;  %v1959_v58 = vadd.f32 %v3655_v53, %v2932_v39  ;;  %v1953_v59 = vpop.f32.mrb[39].mxu0 }
 0x95c   :  { %v2004_v54 = vmax.f32 %v5098_v49, 0.0  ;;  %v1982_v60 = vmul.f32 %v2941_v42, %v1966_v52  ;;  %v1954_v61 = vadd.f32 %v2932_v39, %v1953_v59  ;;  %4034 = vmatpush3.bf16.msra.mxu1 %v4033_v55  ;;  %v4149_v39 = vld [vmem:[#allocation2 + $0x28] sm:$0xff] }
 0x95d   :  { %v5106_v62 = vadd.f32 %v2942_v4, %v1983_v57  ;;  %v1969_v10 = vmax.f32 %v1959_v58, 0.0  ;;  %4035 = vmatprep.subr.bf16.mxu1 %v4349_v0  ;;  %v2979_v57 = vld [vmem:[%s5289_s5 + $0xc8] sm:$0xff]  ;;  %v2980_v58 = vld [vmem:[%s5289_s5 + $0xd0] sm:$0xff] }
 0x95e   :  { %v5109_v20 = vadd.f32 %v2942_v4, %v1982_v60  ;;  %v1968_v21 = vmax.f32 %v1954_v61, 0.0  ;;  %v4036_v22 = vpack.c.bf16 %v2005_v56, %v2004_v54  ;;  %v2982_v61 = vld [vmem:[%s5289_s5 + $0xe0] sm:$0xff] }
 0x95f   :  { %v2007_v26 = vmax.f32 %v5106_v62, 0.0  ;;  %v1985_v27 = vmul.f32 %v2941_v42, %v1969_v10  ;;  %v2983_v62 = vld [vmem:[%s5289_s5 + $0xe8] sm:$0xff] }
 0x960   :  { %v2006_v29 = vmax.f32 %v5109_v20, 0.0  ;;  %v1984_v30 = vmul.f32 %v2941_v42, %v1968_v21  ;;  %4037 = vmatpush3.bf16.msra.mxu1 %v4036_v22  ;;  %v2962_v42 = vld [vmem:[%s5287_s3 + $0xc8] sm:$0xff]  ;;  %v4096_v10 = vpack.c.bf16 %v2983_v62, %v2982_v61  ;;  %v2984_v20 = vld [vmem:[%s5289_s5 + $0xf0] sm:$0xff]  ;;  %v2985_v21 = vld [vmem:[%s5289_s5 + $0xf8] sm:$0xff] }
 0x961   :  { %v5117_v31 = vadd.f32 %v2942_v4, %v1985_v27  ;;  %4038 = vmatprep.subr.bf16.mxu1 %v4349_v0  ;;  %v4072_v50 = vpack.c.bf16 %v2962_v42, %v2961_v47 }
 0x962   :  { %v5120_v63 = vadd.f32 %v2942_v4, %v1984_v30  ;;  %v4039_v2 = vpack.c.bf16 %v2007_v26, %v2006_v29  ;;  %v2964_v4 = vld [vmem:[%s5287_s3 + $0xd8] sm:$0xff]  ;;  %v2969_v30 = vld [vmem:[#allocation8 + $0x3] ss:$0 sm:$0xff] }
 0x963   :  { %v2009_v5 = vmax.f32 %v5117_v31, 0.0  ;;  %4073 = vmatprep.subr.bf16.mxu0 %v4072_v50  ;;  %v4076_v6 = vpack.c.bf16 %v2964_v4, %v2963_v51 }
 0x964   :  { %v2008_v3 = vmax.f32 %v5120_v63, 0.0  ;;  %4040 = vmatpush3.bf16.msra.mxu1 %v4039_v2 }
 0x965   :  { %4041 = vmatprep.subr.bf16.mxu1 %v4349_v0 }
 0x966   :  { %v4042_v8 = vpack.c.bf16 %v2009_v5, %v2008_v3 }
 0x968   :  { %4043 = vmatpush3.bf16.msra.mxu1 %v4042_v8 }
 0x969   :  { %4057 = vmatprep.subr.bf16.mxu1 %v4033_v55 }
 0x96b   :  { %3673 = vmatmul.mubr.msk.f32.vlgmr.msra.gmra.mrb[44].mxu1 %vm149_vm1, %v5133_v13 }
 0x96c   :  { %4059 = vmatpush3.bf16.msra.mxu1 %v4033_v55  ;;  %3710 = vmatprep.mubr.msk.f32.mxu1 %vm149_vm1, %v4144_v18 }
 0x96d   :  { %4061 = vmatprep.subr.bf16.mxu1 %v4036_v22 }
 0x970   :  { %4063 = vmatpush3.bf16.msra.mxu1 %v4036_v22  ;;  %v4100_v22 = vpack.c.bf16 %v2985_v21, %v2984_v20 }
 0x971   :  { %4065 = vmatprep.subr.bf16.mxu1 %v4039_v2 }
 0x974   :  { %4067 = vmatpush3.bf16.msra.mxu1 %v4039_v2 }
 0x975   :  { %4069 = vmatprep.subr.bf16.mxu1 %v4042_v8 }
 0x978   :  { %4071 = vmatpush3.bf16.msra.mxu1 %v4042_v8 }
 0x97b   :  { %3711 = vmatmul.mubr.msk.f32.vlgmr.msra.gmra.mrb[46].mxu1 %vm149_vm1, %v4145_v16 }
 0x97c   :  { %3713 = vmatprep.mubr.msk.f32.mxu1 %vm149_vm1, %v4146_v25 }
 0x97f   :  { %3714 = vmatmul.mubr.msk.f32.gmra.mrb[48].mxu1 %vm149_vm1, %v4147_v34 }
 0x980   :  { %3716 = vmatprep.mubr.msk.f32.mxu1 %vm149_vm1, %v4148_v37 }
 0x983   :  { %3717 = vmatmul.mubr.msk.f32.gmra.mrb[50].mxu1 %vm149_vm1, %v4149_v39 }
 0x984   :  { %3719 = vmatprep.mubr.msk.f32.mxu1 %vm149_vm1, %v4150_v44 }
 0x987   :  { %3720 = vmatmul.mubr.msk.f32.gmra.mrb[52].mxu1 %vm149_vm1, %v4151_v48 }
 0xa3e   :  { %v2076_v7 = vpop.f32.mrb[44].mxu1 }
 0xa3f   :  { %v3674_v11 = vpop.f32.mrb[45].mxu1  ;;  %3692 = vmatmul.mubr.msk.f32.vlgmr.msra.gmra.mrb[40].mxu0 %vm149_vm1, %v2076_v7 }
 0xa40   :  { %4075 = vmatpush3.bf16.msra.mxu0 %v4072_v50  ;;  %v2998_v11 = vld [vmem:[%s5293_s9 + $0x100] sm:$0xff] }
 0xa41   :  { %4077 = vmatprep.subr.bf16.mxu0 %v4076_v6 }
 0xa44   :  { %4079 = vmatpush3.bf16.msra.mxu0 %v4076_v6 }
 0xa45   :  { %4081 = vmatprep.subr.bf16.mxu0 %v4080_v12 }
 0xa48   :  { %4083 = vmatpush3.bf16.msra.mxu0 %v4080_v12  ;;  %v2999_v12 = vld [vmem:[%s5293_s9 + $0x108] sm:$0xff] }
 0xa49   :  { %4085 = vmatprep.subr.bf16.mxu0 %v4084_v23  ;;  %v4117_v17 = vpack.c.bf16 %v2999_v12, %v2998_v11 }
 0xa4c   :  { %4087 = vmatpush3.bf16.msra.mxu0 %v4084_v23  ;;  %v3001_v23 = vld [vmem:[%s5293_s9 + $0x118] sm:$0xff] }
 0xa4d   :  { %4104 = vmatprep.subr.bf16.mxu0 %v4349_v0 }
 0xa4e   :  { %v3712_v24 = vpop.f32.mrb[46].mxu1 }
 0xa4f   :  { %v2229_v32 = vpop.f32.mrb[47].mxu1  ;;  %v2269_v36 = vadd.f32 %v3712_v24, %v2003_v28  ;;  %v4120_v24 = vpack.c.bf16 %v3001_v23, %v3000_v14 }
 0xa50   :  { %v2268_v33 = vadd.f32 %v2229_v32, %v2002_v38  ;;  %v3003_v32 = vld [vmem:[%s5293_s9 + $0x128] sm:$0xff] }
 0xa52   :  { %v3715_v40 = vpop.f32.mrb[48].mxu1  ;;  %3738 = vmatprep.mubr.msk.f32.mxu0 %vm149_vm1, %v2268_v33 }
 0xa53   :  { %v2239_v41 = vpop.f32.mrb[49].mxu1  ;;  %3739 = vmatmul.mubr.msk.f32.vlgmr.msra.gmra.mrb[42].mxu0 %vm149_vm1, %v2269_v36  ;;  %v2271_v52 = vadd.f32 %v3715_v40, %v2005_v56  ;;  %v2978_v56 = vld [vmem:[%s5289_s5 + $0xc0] sm:$0xff]  ;;  %v3004_v36 = vld [vmem:[%s5293_s9 + $0x130] sm:$0xff]  ;;  %v3005_v40 = vld [vmem:[%s5293_s9 + $0x138] sm:$0xff] }
 0xa54   :  { %v2270_v46 = vadd.f32 %v2239_v41, %v2004_v54  ;;  %v4088_v59 = vpack.c.bf16 %v2979_v57, %v2978_v56  ;;  %v2981_v54 = vld [vmem:[%s5289_s5 + $0xd8] sm:$0xff]  ;;  %v4126_v41 = vpack.c.bf16 %v3005_v40, %v3004_v36  ;;  %v3007_v36 = vld [vmem:[%s5294_s10] ss:$0 sm:$0xff] }
 0xa55   :  { %v4092_v60 = vpack.c.bf16 %v2981_v54, %v2980_v58 }
 0xa56   :  { %v3718_v53 = vpop.f32.mrb[50].mxu1  ;;  %3741 = vmatprep.mubr.msk.f32.mxu0 %vm149_vm1, %v2270_v46  ;;  %4089 = vmatprep.subr.bf16.mxu1 %v4088_v59  ;;  %v2986_v46 = vld [vmem:[#allocation10 + $0x3] ss:$0 sm:$0xff] }
 0xa57   :  { %v2249_v19 = vpop.f32.mrb[51].mxu1  ;;  %3742 = vmatmul.mubr.msk.f32.gmra.mrb[44].mxu0 %vm149_vm1, %v2271_v52  ;;  %v2273_v28 = vadd.f32 %v3718_v53, %v2007_v26  ;;  %4091 = vmatpush3.bf16.msra.mxu1 %v4088_v59 }
 0xa58   :  { %v2272_v15 = vadd.f32 %v2249_v19, %v2006_v29  ;;  %4093 = vmatprep.subr.bf16.mxu1 %v4092_v60 }
 0xa5a   :  { %v3721_v38 = vpop.f32.mrb[52].mxu1  ;;  %3744 = vmatprep.mubr.msk.f32.mxu0 %vm149_vm1, %v2272_v15  ;;  %v2995_v15 = vld [vmem:[#allocation11 + $0x3] ss:$0 sm:$0xff] }
 0xa5b   :  { %v2259_v49 = vpop.f32.mrb[53].mxu1  ;;  %3745 = vmatmul.mubr.msk.f32.gmra.mrb[46].mxu0 %vm149_vm1, %v2273_v28  ;;  %v2275_v55 = vadd.f32 %v3721_v38, %v2009_v5  ;;  %4095 = vmatpush3.bf16.msra.mxu1 %v4092_v60 }
 0xa5c   :  { %v2274_v43 = vadd.f32 %v2259_v49, %v2008_v3  ;;  %4097 = vmatprep.subr.bf16.mxu1 %v4096_v10  ;;  %v2996_v49 = vld [vmem:[#allocation13 + $0x3] ss:$0 sm:$0xff] }
 0xa5e   :  { %3747 = vmatprep.mubr.msk.f32.mxu0 %vm149_vm1, %v2274_v43 }
 0xa5f   :  { %3748 = vmatmul.mubr.msk.f32.gmra.mrb[48].mxu0 %vm149_vm1, %v2275_v55  ;;  %4099 = vmatpush3.bf16.msra.mxu1 %v4096_v10 }
 0xa60   :  { %3794 = vmatprep.mubr.msk.f32.mxu0 %vm4350_vm0, %v4351_v1  ;;  %4101 = vmatprep.subr.bf16.mxu1 %v4100_v22 }
 0xa63   :  { %4103 = vmatpush3.bf16.msra.mxu1 %v4100_v22 }
 0xa64   :  { %4116 = vmatprep.subr.bf16.mxu1 %v4349_v0 }
 0xb12   :  { %v2158_v26 = vpop.f32.mrb[40].mxu0 }
 0xb13   :  { %v5223_v27 = vadd.f32 %v2158_v26, %v5051_v35  ;;  %v3693_v29 = vpop.f32.mrb[41].mxu0 }
 0xb26   :  { %v3740_v31 = vpop.f32.mrb[42].mxu0 }
 0xb27   :  { %v2389_v63 = vadd.f32 %v3740_v31, %v2969_v30  ;;  %v2383_v2 = vpop.f32.mrb[43].mxu0 }
 0xb28   :  { %v2384_v5 = vadd.f32 %v2969_v30, %v2383_v2 }
 0xb29   :  { %v2423_v18 = vmax.f32 %v2389_v63, 0.0 }
 0xb2a   :  { %v2422_v3 = vmax.f32 %v2384_v5, 0.0  ;;  %v3743_v8 = vpop.f32.mrb[44].mxu0 }
 0xb2b   :  { %v2399_v16 = vadd.f32 %v3743_v8, %v2969_v30  ;;  %v2393_v25 = vpop.f32.mrb[45].mxu0 }
 0xb2c   :  { %v2394_v34 = vadd.f32 %v2969_v30, %v2393_v25  ;;  %3766 = vmatprep.mubr.msk.f32.mxu1 %vm149_vm1, %v2422_v3 }
 0xb2d   :  { %3767 = vmatmul.mubr.msk.f32.vlgmr.msra.gmra.mrb[54].mxu1 %vm149_vm1, %v2423_v18  ;;  %v2425_v35 = vmax.f32 %v2399_v16, 0.0 }
 0xb2e   :  { %v2424_v37 = vmax.f32 %v2394_v34, 0.0  ;;  %v3746_v39 = vpop.f32.mrb[46].mxu0  ;;  %4118 = vmatpush3.bf16.msra.mxu1 %v4117_v17 }
 0xb2f   :  { %v2409_v44 = vadd.f32 %v3746_v39, %v2969_v30  ;;  %v2403_v48 = vpop.f32.mrb[47].mxu0  ;;  %4119 = vmatprep.subr.bf16.mxu1 %v4349_v0 }
 0xb30   :  { %v2404_v47 = vadd.f32 %v2969_v30, %v2403_v48  ;;  %3769 = vmatprep.mubr.msk.f32.mxu1 %vm149_vm1, %v2424_v37 }
 0xb31   :  { %3770 = vmatmul.mubr.msk.f32.gmra.mrb[56].mxu1 %vm149_vm1, %v2425_v35  ;;  %v2427_v51 = vmax.f32 %v2409_v44, 0.0 }
 0xb32   :  { %v2426_v42 = vmax.f32 %v2404_v47, 0.0  ;;  %v3749_v50 = vpop.f32.mrb[48].mxu0  ;;  %4121 = vmatpush3.bf16.msra.mxu1 %v4120_v24 }
 0xb33   :  { %v2419_v4 = vadd.f32 %v3749_v50, %v2969_v30  ;;  %v2413_v6 = vpop.f32.mrb[49].mxu0  ;;  %4122 = vmatprep.subr.bf16.mxu1 %v4349_v0 }
 0xb34   :  { %v2414_v7 = vadd.f32 %v2969_v30, %v2413_v6  ;;  %3772 = vmatprep.mubr.msk.f32.mxu1 %vm149_vm1, %v2426_v42 }
 0xb35   :  { %3773 = vmatmul.mubr.msk.f32.gmra.mrb[58].mxu1 %vm149_vm1, %v2427_v51  ;;  %v2429_v45 = vmax.f32 %v2419_v4, 0.0 }
 0xb36   :  { %v2428_v9 = vmax.f32 %v2414_v7, 0.0 }
 0xb38   :  { %3775 = vmatprep.mubr.msk.f32.mxu1 %vm149_vm1, %v2428_v9 }
 0xb39   :  { %3776 = vmatmul.mubr.msk.f32.gmra.mrb[60].mxu1 %vm149_vm1, %v2429_v45 }
 0xb3a   :  { %3813 = vmatprep.mubr.msk.f32.mxu1 %vm4350_vm0, %v4351_v1  ;;  %v3002_v1 = vld [vmem:[%s5293_s9 + $0x120] sm:$0xff] }
 0xb3b   :  { %v4123_v33 = vpack.c.bf16 %v3003_v32, %v3002_v1 }
 0xb3d   :  { %4124 = vmatpush3.bf16.msra.mxu1 %v4123_v33 }
 0xb3e   :  { %4125 = vmatprep.subr.bf16.mxu1 %v4349_v0 }
 0xb41   :  { %4127 = vmatpush3.bf16.msra.mxu1 %v4126_v41 }
 0xc00   :  { %v3768_v52 = vpop.f32.mrb[54].mxu1 }
 0xc01   :  { %v2543_v53 = vadd.f32 %v3768_v52, %v2986_v46  ;;  %v2537_v19 = vpop.f32.mrb[55].mxu1 }
 0xc02   :  { %v2538_v28 = vadd.f32 %v2986_v46, %v2537_v19 }
 0xc03   :  { %v2577_v38 = vmax.f32 %v2543_v53, 0.0 }
 0xc04   :  { %v2576_v43 = vmax.f32 %v2538_v28, 0.0  ;;  %v3771_v55 = vpop.f32.mrb[56].mxu1 }
 0xc05   :  { %v2593_v56 = vmul.f32 %v2995_v15, %v2577_v38  ;;  %v2553_v57 = vadd.f32 %v3771_v55, %v2986_v46  ;;  %v2547_v58 = vpop.f32.mrb[57].mxu1 }
 0xc06   :  { %v2592_v59 = vmul.f32 %v2995_v15, %v2576_v43  ;;  %v2548_v54 = vadd.f32 %v2986_v46, %v2547_v58 }
 0xc07   :  { %v2609_v60 = vadd.f32 %v2996_v49, %v2593_v56  ;;  %v2579_v61 = vmax.f32 %v2553_v57, 0.0 }
 0xc08   :  { %v2608_v62 = vadd.f32 %v2996_v49, %v2592_v59  ;;  %v2578_v10 = vmax.f32 %v2548_v54, 0.0  ;;  %v3774_v20 = vpop.f32.mrb[58].mxu1 }
 0xc09   :  { %v2617_v21 = vmax.f32 %v2609_v60, 0.0  ;;  %v2595_v22 = vmul.f32 %v2995_v15, %v2579_v61  ;;  %v2563_v26 = vadd.f32 %v3774_v20, %v2986_v46  ;;  %v2557_v29 = vpop.f32.mrb[59].mxu1 }
 0xc0a   :  { %v2616_v30 = vmax.f32 %v2608_v62, 0.0  ;;  %v2594_v31 = vmul.f32 %v2995_v15, %v2578_v10  ;;  %v2558_v63 = vadd.f32 %v2986_v46, %v2557_v29 }
 0xc0b   :  { %v2611_v2 = vadd.f32 %v2996_v49, %v2595_v22  ;;  %v2581_v5 = vmax.f32 %v2563_v26, 0.0 }
 0xc0c   :  { %v2610_v3 = vadd.f32 %v2996_v49, %v2594_v31  ;;  %v2580_v8 = vmax.f32 %v2558_v63, 0.0  ;;  %v3777_v18 = vpop.f32.mrb[60].mxu1  ;;  %v4105_v16 = vpack.c.bf16 %v2617_v21, %v2616_v30 }
 0xc0d   :  { %v2619_v25 = vmax.f32 %v2611_v2, 0.0  ;;  %v2597_v34 = vmul.f32 %v2995_v15, %v2581_v5  ;;  %v2573_v37 = vadd.f32 %v3777_v18, %v2986_v46  ;;  %v2567_v39 = vpop.f32.mrb[61].mxu1 }
 0xc0e   :  { %v2618_v35 = vmax.f32 %v2610_v3, 0.0  ;;  %v2596_v44 = vmul.f32 %v2995_v15, %v2580_v8  ;;  %v2568_v48 = vadd.f32 %v2986_v46, %v2567_v39  ;;  %4106 = vmatpush3.bf16.msra.mxu0 %v4105_v16 }
 0xc0f   :  { %v2613_v47 = vadd.f32 %v2996_v49, %v2597_v34  ;;  %v2583_v42 = vmax.f32 %v2573_v37, 0.0  ;;  %4107 = vmatprep.subr.bf16.mxu0 %v4349_v0 }
 0xc10   :  { %v2612_v50 = vadd.f32 %v2996_v49, %v2596_v44  ;;  %v2582_v51 = vmax.f32 %v2568_v48, 0.0  ;;  %v4108_v4 = vpack.c.bf16 %v2619_v25, %v2618_v35 }
 0xc11   :  { %v2621_v6 = vmax.f32 %v2613_v47, 0.0  ;;  %v2599_v7 = vmul.f32 %v2995_v15, %v2583_v42 }
 0xc12   :  { %v2620_v9 = vmax.f32 %v2612_v50, 0.0  ;;  %v2598_v45 = vmul.f32 %v2995_v15, %v2582_v51  ;;  %4109 = vmatpush3.bf16.msra.mxu0 %v4108_v4 }
 0xc13   :  { %v2615_v11 = vadd.f32 %v2996_v49, %v2599_v7  ;;  %4110 = vmatprep.subr.bf16.mxu0 %v4349_v0 }
 0xc14   :  { %v2614_v12 = vadd.f32 %v2996_v49, %v2598_v45  ;;  %v4111_v14 = vpack.c.bf16 %v2621_v6, %v2620_v9 }
 0xc15   :  { %v2623_v17 = vmax.f32 %v2615_v11, 0.0 }
 0xc16   :  { %v2622_v23 = vmax.f32 %v2614_v12, 0.0  ;;  %4112 = vmatpush3.bf16.msra.mxu0 %v4111_v14 }
 0xc17   :  { %4113 = vmatprep.subr.bf16.mxu0 %v4349_v0 }
 0xc18   :  { %v4114_v24 = vpack.c.bf16 %v2623_v17, %v2622_v23 }
 0xc1a   :  { %4115 = vmatpush3.bf16.msra.mxu0 %v4114_v24 }
 0xc1d   :  { %3795 = vmatmul.mubr.msk.f32.vlgmr.msra.gmra.mrb[50].mxu0 %vm149_vm1, %v5133_v13 }
 0xcf0   :  { %v2690_v1 = vpop.f32.mrb[50].mxu0 }
 0xcf1   :  { %v3796_v32 = vpop.f32.mrb[51].mxu0  ;;  %3814 = vmatmul.mubr.msk.f32.vlgmr.msra.gmra.mrb[62].mxu1 %vm149_vm1, %v2690_v1 }
 0xdc4   :  { %v2772_v33 = vpop.f32.mrb[62].mxu1 }
 0xdc5   :  { %v2776_v40 = vadd.f32 %v2772_v33, %v5223_v27  ;;  %v3815_v41 = vpop.f32.mrb[63].mxu1 }
 0xdc7   :  { %v2784_v0 = vadd.f32 %v3007_v36, %v2776_v40 }
 0xdc9   :  { %2786 = vst.msk [vmem:[#allocation14] sm:$0xf] %vm2785_vm2, %v2784_v0 }
 0xdca   :  { %4317 = shalt.err (!%p4314_p4)
}
 0xdcb   :  { %s4318_s10 = scalar_lea.hbm %s5295_s11, 64 }
 0xdcc   :  { %p4319_p5 = scmp.ne.s32.totalorder %s5295_s11, %s4318_s10  ;;  %p4322_p6 = scmp.lt.u32.totalorder %s4318_s10, %s5295_s11 }
 0xdce   :  { %p4324_p7 = pnand %p4322_p6, %p4319_p5 }
 0xdd0   :  { %4327 = shalt.err (!%p4324_p7)
}
 0xdd1   :  { %2796 = dma.vmem_to_hbm [thread:$0]  %s2794_s15, 64, %s5295_s11, [#allocation4]  }
 0xdd2   :  { %4336 = dma.done.wait [#allocation4], 64  }
 0xdd3   :  { %4337 = vsyncadd [#allocation4], 4294967232 }
 0xdd4   :  { %2800 = vsyncpa [#allocation3], 1 }
 0xdd5   :  { %2801 = vsyncpa [#allocation6], 1 }
 0xdd6   :  { %2802 = vsyncpa [#allocation9], 1 }
 0xdd7   :  { %2803 = vsyncpa [#allocation12], 1 }
 0xdd8   :  { %2804 = vsyncpa [#allocation4], 1 }

</bundles_post_ra>
